<compile_context>
chip_gen: v7x
topology: tpu7x:2x2x1
jax: 0.10.0
libtpu: 0.0.40
codegen_flags: <defaults>
</compile_context>

<pallas_src>
import math

import jax
import jax.numpy as jnp
import numpy as np
from jax.experimental import pallas as pl
from jax.experimental.pallas import tpu as pltpu  # noqa: F401  (TPU backend assumed)


# ----------------------------------------------------------------------------
# Fused decoder forward: all layers, all batches, all heads in one pallas_call.
# ----------------------------------------------------------------------------
def make_decoder_forward(num_heads, head_dim):
    H, Dh = num_heads, head_dim
    HDh = H * Dh

    def kernel(x_ref, mask_ref, wqkv_ref, wo_ref, w1_ref, w2_ref, vec_ref, out_ref):
        L, D, _ = wqkv_ref.shape
        F = w1_ref.shape[-1]
        eps = 1e-5
        inv_d = 1.0 / D
        inv_sqrt2 = 1.0 / math.sqrt(2.0)

        x = x_ref[...]                # (M, D) f32, VMEM-resident across all layers
        add_mask = mask_ref[...]      # (M, M) additive 0 / -1e30, resident, loaded once

        for l in range(L):            # static unroll over layers
            vec = vec_ref[l]          # (8, 128): all per-layer gains/biases, one packed slab
            ln1_g, ln1_b = vec[0:1, :D], vec[1:2, :D]
            bo = vec[2:3, :D]
            ln2_g, ln2_b = vec[3:4, :D], vec[4:5, :D]
            b1, b2 = vec[5:6, :F], vec[6:7, :D]

            # -------- x = x + Attention(LayerNorm(x), mask) --------
            # single-pass LN stats: two independent lane reductions
            mu = jnp.sum(x, axis=-1, keepdims=True) * inv_d
            ex2 = jnp.sum(x * x, axis=-1, keepdims=True) * inv_d
            xn = (x - mu) * jax.lax.rsqrt(ex2 - mu * mu + eps) * ln1_g + ln1_b

            # one fused QKV matmul; Q columns already carry the 1/sqrt(Dh) scale
            qkv = jnp.dot(xn, wqkv_ref[l], preferred_element_type=jnp.float32)  # (M, 3*H*Dh)

            head_out = []
            for h in range(H):        # static lane slices -> tiny 2D matmuls per head
                q_h = qkv[:, h * Dh:(h + 1) * Dh]
                k_h = qkv[:, HDh + h * Dh:HDh + (h + 1) * Dh]
                v_h = qkv[:, 2 * HDh + h * Dh:2 * HDh + (h + 1) * Dh]
                s = jax.lax.dot_general(q_h, k_h, (((1,), (1,)), ((), ())),
                                        preferred_element_type=jnp.float32) + add_mask
                s = s - jnp.max(s, axis=-1, keepdims=True)
                e = jnp.exp(s)
                p = e / jnp.sum(e, axis=-1, keepdims=True)          # exact softmax
                head_out.append(jnp.dot(p, v_h, preferred_element_type=jnp.float32))
            o = jnp.concatenate(head_out, axis=-1)                  # (M, H*Dh)
            x = x + jnp.dot(o, wo_ref[l], preferred_element_type=jnp.float32) + bo

            # -------- x = x + MLP(LayerNorm(x)) --------
            mu2 = jnp.sum(x, axis=-1, keepdims=True) * inv_d
            ex22 = jnp.sum(x * x, axis=-1, keepdims=True) * inv_d
            xn2 = (x - mu2) * jax.lax.rsqrt(ex22 - mu2 * mu2 + eps) * ln2_g + ln2_b
            h1 = jnp.dot(xn2, w1_ref[l], preferred_element_type=jnp.float32) + b1
            h1 = 0.5 * h1 * (1.0 + jax.lax.erf(h1 * inv_sqrt2))     # exact (erf) GELU
            x = x + jnp.dot(h1, w2_ref[l], preferred_element_type=jnp.float32) + b2

        out_ref[...] = x

    def forward(x, add_mask, packed):
        """Equivalent of TransformerDecoder.forward (dropout=0 / eval), one fused kernel."""
        B, N, D = x.shape
        M = B * N
        wqkv, wo, w1, w2, vec = packed
        out = pl.pallas_call(
            kernel,
            out_shape=jax.ShapeDtypeStruct((M, D), jnp.float32),
        )(x.reshape(M, D), add_mask, wqkv, wo, w1, w2, vec)
        return out.reshape(B, N, D)

    return forward


# ----------------------------------------------------------------------------
# Parameters (natural / PyTorch layout) + one-time packing for the kernel
# ----------------------------------------------------------------------------
def init_params(key, num_layers, dim, num_heads, head_dim, mlp_hidden):
    L, D, H, Dh, F = num_layers, dim, num_heads, head_dim, mlp_hidden
    k = jax.random.split(key, 6)
    return dict(
        ln1_g=jnp.ones((L, D), jnp.float32),
        ln1_b=jnp.zeros((L, D), jnp.float32),
        # qkv Linear weight, columns ordered (3, H, Dh) flattened as in PyTorch
        wqkv=0.05 * jax.random.normal(k[0], (L, D, 3 * H * Dh), jnp.float32),
        wo=0.05 * jax.random.normal(k[1], (L, H * Dh, D), jnp.float32),
        bo=0.05 * jax.random.normal(k[2], (L, D), jnp.float32),
        ln2_g=jnp.ones((L, D), jnp.float32),
        ln2_b=jnp.zeros((L, D), jnp.float32),
        w1=0.05 * jax.random.normal(k[3], (L, D, F), jnp.float32),
        b1=0.05 * jax.random.normal(k[4], (L, F), jnp.float32),
        w2=0.05 * jax.random.normal(k[5], (L, F, D), jnp.float32),
        b2=jnp.zeros((L, D), jnp.float32),
    )


def pack_params(params, num_heads, head_dim):
    """One-time weight prep: fold attention scale into Q, pack small vectors into one slab."""
    wqkv = params["wqkv"]
    L, D, _ = wqkv.shape
    F = params["w1"].shape[-1]
    assert D <= 128 and F <= 128, "vector slab packing assumes D, F <= 128"
    HDh = num_heads * head_dim
    scale = jnp.float32(head_dim ** (-0.5))
    wqkv = wqkv.at[:, :, :HDh].multiply(scale)          # fold 1/sqrt(Dh) into Q columns

    slab = jnp.zeros((L, 8, 128), jnp.float32)          # 7 per-layer vectors -> one input
    slab = slab.at[:, 0, :D].set(params["ln1_g"])
    slab = slab.at[:, 1, :D].set(params["ln1_b"])
    slab = slab.at[:, 2, :D].set(params["bo"])
    slab = slab.at[:, 3, :D].set(params["ln2_g"])
    slab = slab.at[:, 4, :D].set(params["ln2_b"])
    slab = slab.at[:, 5, :F].set(params["b1"])
    slab = slab.at[:, 6, :D].set(params["b2"])
    return (wqkv, params["wo"], params["w1"], params["w2"], slab)


# ----------------------------------------------------------------------------
# Mask construction (numpy, OUTSIDE jit) — block-causal, then batch block-diag
# ----------------------------------------------------------------------------
def compute_mask_np(seq_len, num_elements):
    """TransformerDecoder.compute_mask: (1, T*E, T*E), 1 = attend, 0 = masked."""
    orig = np.triu(np.ones((seq_len, seq_len), np.float32)) - np.eye(seq_len, dtype=np.float32)
    m = np.repeat(np.repeat(orig, num_elements, axis=-1), num_elements, axis=-2)
    return (1.0 - m)[None]


def build_additive_mask_np(mask, batch, seq):
    """Additive (M, M) mask for the batch-folded layout: 0 where attendable, -1e30 elsewhere."""
    m = mask[0] if mask.ndim == 3 else mask              # (N, N)
    attend = m > 0.5
    M = batch * seq
    bid = np.arange(M) // seq
    same_batch = bid[:, None] == bid[None, :]
    allowed = same_batch & np.tile(attend, (batch, batch))
    return jnp.asarray(np.where(allowed, 0.0, -1e30).astype(np.float32))


# ----------------------------------------------------------------------------
# Pure-JAX reference mirroring the PyTorch forward (for verification)
# ----------------------------------------------------------------------------
def reference_forward(x, params, mask, num_heads, head_dim):
    B, N, D = x.shape
    H, Dh = num_heads, head_dim
    HDh = H * Dh
    L = params["wqkv"].shape[0]
    scale = Dh ** (-0.5)
    eps = 1e-5
    attend = (mask[0] if mask.ndim == 3 else mask) > 0.5

    def ln(v, g, b):
        mu = jnp.mean(v, axis=-1, keepdims=True)
        var = jnp.mean((v - mu) ** 2, axis=-1, keepdims=True)
        return (v - mu) / jnp.sqrt(var + eps) * g + b

    for l in range(L):
        xn = ln(x, params["ln1_g"][l], params["ln1_b"][l])
        qkv = xn @ params["wqkv"][l]                                     # (B, N, 3*H*Dh)
        qkv = qkv.reshape(B, N, 3, H, Dh).transpose(2, 0, 3, 1, 4)        # (3, B, H, N, Dh)
        q, k, v = qkv[0], qkv[1], qkv[2]
        att = jnp.einsum("bhnd,bhmd->bhnm", q, k) * scale
        att = jnp.where(attend[None, None], att, -jnp.inf)
        att = jax.nn.softmax(att, axis=-1)
        o = jnp.einsum("bhnm,bhmd->bhnd", att, v)
        o = o.transpose(0, 2, 1, 3).reshape(B, N, HDh)
        x = x + o @ params["wo"][l] + params["bo"][l]
        xn2 = ln(x, params["ln2_g"][l], params["ln2_b"][l])
        h1 = xn2 @ params["w1"][l] + params["b1"][l]
        h1 = 0.5 * h1 * (1.0 + jax.lax.erf(h1 / math.sqrt(2.0)))
        x = x + h1 @ params["w2"][l] + params["b2"][l]
    return x


# ----------------------------------------------------------------------------
if __name__ == "__main__":
    # TransformerDecoder(input_size=32, num_layers=2, num_heads=2,
    #                    head_output_size=16, mlp_hidden_size=64, dropout=0.0)
    B, T, E = 2, 4, 2          # batch, temporal steps, tokens-per-step
    N = T * E                  # sequence length seen by attention (8)
    D = 32                     # input_size
    H, DH = 2, 16              # num_heads, head_output_size
    MLP = 64                   # mlp_hidden_size
    L = 2                      # num_layers

    key = jax.random.PRNGKey(0)
    kx, kp = jax.random.split(key)
    x = jax.random.normal(kx, (B, N, D), jnp.float32)

    params = init_params(kp, L, D, H, DH, MLP)      # natural (PyTorch-layout) params
    packed = pack_params(params, H, DH)             # one-time prep for the kernel

    mask_np = compute_mask_np(T, E)                 # (1, N, N), 1 = attend (numpy)
    add_mask = build_additive_mask_np(mask_np, B, N)  # (M, M) additive, built outside jit

    fwd = jax.jit(make_decoder_forward(H, DH))
    out = jax.block_until_ready(fwd(x, add_mask, packed))

    ref = reference_forward(x, params, jnp.asarray(mask_np), H, DH)
    # Softmax is exact now; the remaining tolerance covers f32 matmul pass-order /
    # single-pass-vs-two-pass LayerNorm differences between the MXU kernel and
    # the XLA reference (observed error is far below this bound).
    np.testing.assert_allclose(np.asarray(out), np.asarray(ref), rtol=1e-3, atol=1e-3)

    print("KERNEL_OK")
</pallas_src>

<mosaic_0001>
module attributes {stable_mosaic.version = 11 : i64} {
  func.func @kernel(%arg0: memref<16x32xf32, #tpu.memory_space<vmem>>, %arg1: memref<16x16xf32, #tpu.memory_space<vmem>>, %arg2: memref<2x32x96xf32, #tpu.memory_space<vmem>>, %arg3: memref<2x32x32xf32, #tpu.memory_space<vmem>>, %arg4: memref<2x32x64xf32, #tpu.memory_space<vmem>>, %arg5: memref<2x64x32xf32, #tpu.memory_space<vmem>>, %arg6: memref<2x8x128xf32, #tpu.memory_space<vmem>>, %arg7: memref<16x32xf32, #tpu.memory_space<vmem>>) attributes {dimension_semantics = [], scalar_prefetch = 0 : i64, scratch_operands = 0 : i64, tpu.core_type = #tpu.core_type<tc>} {
    %c0 = arith.constant 0 : index
    %c0_0 = arith.constant 0 : index
    %0 = vector.load %arg0[%c0, %c0_0] : memref<16x32xf32, #tpu.memory_space<vmem>>, vector<16x32xf32>
    %c0_1 = arith.constant 0 : index
    %c0_2 = arith.constant 0 : index
    %1 = vector.load %arg1[%c0_1, %c0_2] : memref<16x16xf32, #tpu.memory_space<vmem>>, vector<16x16xf32>
    %c0_3 = arith.constant 0 : index
    %c0_4 = arith.constant 0 : index
    %c0_5 = arith.constant 0 : index
    %2 = vector.load %arg6[%c0_3, %c0_4, %c0_5] : memref<2x8x128xf32, #tpu.memory_space<vmem>>, vector<1x8x128xf32>
    %3 = vector.shape_cast %2 : vector<1x8x128xf32> to vector<8x128xf32>
    %4 = vector.extract_strided_slice %3 {offsets = [0, 0], sizes = [1, 32], strides = [1, 1]} : vector<8x128xf32> to vector<1x32xf32>
    %5 = vector.extract_strided_slice %3 {offsets = [1, 0], sizes = [1, 32], strides = [1, 1]} : vector<8x128xf32> to vector<1x32xf32>
    %6 = vector.extract_strided_slice %3 {offsets = [2, 0], sizes = [1, 32], strides = [1, 1]} : vector<8x128xf32> to vector<1x32xf32>
    %7 = vector.extract_strided_slice %3 {offsets = [3, 0], sizes = [1, 32], strides = [1, 1]} : vector<8x128xf32> to vector<1x32xf32>
    %8 = vector.extract_strided_slice %3 {offsets = [4, 0], sizes = [1, 32], strides = [1, 1]} : vector<8x128xf32> to vector<1x32xf32>
    %9 = vector.extract_strided_slice %3 {offsets = [5, 0], sizes = [1, 64], strides = [1, 1]} : vector<8x128xf32> to vector<1x64xf32>
    %10 = vector.extract_strided_slice %3 {offsets = [6, 0], sizes = [1, 32], strides = [1, 1]} : vector<8x128xf32> to vector<1x32xf32>
    %cst = arith.constant dense<0.000000e+00> : vector<16xf32>
    %11 = vector.multi_reduction <add>, %0, %cst [1] : vector<16x32xf32> to vector<16xf32>
    %12 = vector.shape_cast %11 : vector<16xf32> to vector<16x1xf32>
    %cst_6 = arith.constant 3.125000e-02 : f32
    %13 = vector.broadcast %cst_6 : f32 to vector<16x1xf32>
    %14 = arith.mulf %12, %13 : vector<16x1xf32>
    %15 = arith.mulf %0, %0 : vector<16x32xf32>
    %cst_7 = arith.constant dense<0.000000e+00> : vector<16xf32>
    %16 = vector.multi_reduction <add>, %15, %cst_7 [1] : vector<16x32xf32> to vector<16xf32>
    %17 = vector.shape_cast %16 : vector<16xf32> to vector<16x1xf32>
    %cst_8 = arith.constant 3.125000e-02 : f32
    %18 = vector.broadcast %cst_8 : f32 to vector<16x1xf32>
    %19 = arith.mulf %17, %18 : vector<16x1xf32>
    %20 = vector.broadcast %14 : vector<16x1xf32> to vector<16x32xf32>
    %21 = arith.subf %0, %20 : vector<16x32xf32>
    %22 = arith.mulf %14, %14 : vector<16x1xf32>
    %23 = arith.subf %19, %22 : vector<16x1xf32>
    %cst_9 = arith.constant 9.99999974E-6 : f32
    %24 = vector.broadcast %cst_9 : f32 to vector<16x1xf32>
    %25 = arith.addf %23, %24 : vector<16x1xf32>
    %26 = math.rsqrt %25 : vector<16x1xf32>
    %27 = vector.broadcast %26 : vector<16x1xf32> to vector<16x32xf32>
    %28 = arith.mulf %21, %27 : vector<16x32xf32>
    %29 = vector.broadcast %4 : vector<1x32xf32> to vector<16x32xf32>
    %30 = arith.mulf %28, %29 : vector<16x32xf32>
    %31 = vector.broadcast %5 : vector<1x32xf32> to vector<16x32xf32>
    %32 = arith.addf %30, %31 : vector<16x32xf32>
    %c0_10 = arith.constant 0 : index
    %c0_11 = arith.constant 0 : index
    %c0_12 = arith.constant 0 : index
    %33 = vector.load %arg2[%c0_10, %c0_11, %c0_12] : memref<2x32x96xf32, #tpu.memory_space<vmem>>, vector<1x32x96xf32>
    %34 = vector.shape_cast %33 : vector<1x32x96xf32> to vector<32x96xf32>
    %cst_13 = arith.constant dense<0.000000e+00> : vector<16x96xf32>
    %35 = tpu.matmul %32, %34, %cst_13 {dimension_numbers = #tpu.dot_dimension_numbers<[1], [0], [0], [1], [0, 0, 1, 1], [], []>} : vector<16x32xf32>, vector<32x96xf32>, vector<16x96xf32> -> vector<16x96xf32>
    %36 = vector.extract_strided_slice %35 {offsets = [0, 0], sizes = [16, 16], strides = [1, 1]} : vector<16x96xf32> to vector<16x16xf32>
    %37 = vector.extract_strided_slice %35 {offsets = [0, 32], sizes = [16, 16], strides = [1, 1]} : vector<16x96xf32> to vector<16x16xf32>
    %38 = vector.extract_strided_slice %35 {offsets = [0, 64], sizes = [16, 16], strides = [1, 1]} : vector<16x96xf32> to vector<16x16xf32>
    %cst_14 = arith.constant dense<0.000000e+00> : vector<16x16xf32>
    %39 = tpu.matmul %36, %37, %cst_14 {dimension_numbers = #tpu.dot_dimension_numbers<[1], [1], [0], [0], [0, 0, 1, 0], [], []>} : vector<16x16xf32>, vector<16x16xf32>, vector<16x16xf32> -> vector<16x16xf32>
    %40 = arith.addf %39, %1 : vector<16x16xf32>
    %cst_15 = arith.constant dense<0xFF800000> : vector<16xf32>
    %41 = vector.multi_reduction <maximumf>, %40, %cst_15 [1] : vector<16x16xf32> to vector<16xf32>
    %42 = vector.shape_cast %41 : vector<16xf32> to vector<16x1xf32>
    %43 = vector.broadcast %42 : vector<16x1xf32> to vector<16x16xf32>
    %44 = arith.subf %40, %43 : vector<16x16xf32>
    %45 = math.exp %44 : vector<16x16xf32>
    %cst_16 = arith.constant dense<0.000000e+00> : vector<16xf32>
    %46 = vector.multi_reduction <add>, %45, %cst_16 [1] : vector<16x16xf32> to vector<16xf32>
    %47 = vector.shape_cast %46 : vector<16xf32> to vector<16x1xf32>
    %48 = vector.broadcast %47 : vector<16x1xf32> to vector<16x16xf32>
    %49 = arith.divf %45, %48 : vector<16x16xf32>
    %cst_17 = arith.constant dense<0.000000e+00> : vector<16x16xf32>
    %50 = tpu.matmul %49, %38, %cst_17 {dimension_numbers = #tpu.dot_dimension_numbers<[1], [0], [0], [1], [0, 0, 1, 1], [], []>} : vector<16x16xf32>, vector<16x16xf32>, vector<16x16xf32> -> vector<16x16xf32>
    %51 = vector.extract_strided_slice %35 {offsets = [0, 16], sizes = [16, 16], strides = [1, 1]} : vector<16x96xf32> to vector<16x16xf32>
    %52 = vector.extract_strided_slice %35 {offsets = [0, 48], sizes = [16, 16], strides = [1, 1]} : vector<16x96xf32> to vector<16x16xf32>
    %53 = vector.extract_strided_slice %35 {offsets = [0, 80], sizes = [16, 16], strides = [1, 1]} : vector<16x96xf32> to vector<16x16xf32>
    %cst_18 = arith.constant dense<0.000000e+00> : vector<16x16xf32>
    %54 = tpu.matmul %51, %52, %cst_18 {dimension_numbers = #tpu.dot_dimension_numbers<[1], [1], [0], [0], [0, 0, 1, 0], [], []>} : vector<16x16xf32>, vector<16x16xf32>, vector<16x16xf32> -> vector<16x16xf32>
    %55 = arith.addf %54, %1 : vector<16x16xf32>
    %cst_19 = arith.constant dense<0xFF800000> : vector<16xf32>
    %56 = vector.multi_reduction <maximumf>, %55, %cst_19 [1] : vector<16x16xf32> to vector<16xf32>
    %57 = vector.shape_cast %56 : vector<16xf32> to vector<16x1xf32>
    %58 = vector.broadcast %57 : vector<16x1xf32> to vector<16x16xf32>
    %59 = arith.subf %55, %58 : vector<16x16xf32>
    %60 = math.exp %59 : vector<16x16xf32>
    %cst_20 = arith.constant dense<0.000000e+00> : vector<16xf32>
    %61 = vector.multi_reduction <add>, %60, %cst_20 [1] : vector<16x16xf32> to vector<16xf32>
    %62 = vector.shape_cast %61 : vector<16xf32> to vector<16x1xf32>
    %63 = vector.broadcast %62 : vector<16x1xf32> to vector<16x16xf32>
    %64 = arith.divf %60, %63 : vector<16x16xf32>
    %cst_21 = arith.constant dense<0.000000e+00> : vector<16x16xf32>
    %65 = tpu.matmul %64, %53, %cst_21 {dimension_numbers = #tpu.dot_dimension_numbers<[1], [0], [0], [1], [0, 0, 1, 1], [], []>} : vector<16x16xf32>, vector<16x16xf32>, vector<16x16xf32> -> vector<16x16xf32>
    %66 = tpu.concatenate %50, %65 in 1 : vector<16x16xf32>, vector<16x16xf32> -> vector<16x32xf32>
    %c0_22 = arith.constant 0 : index
    %c0_23 = arith.constant 0 : index
    %c0_24 = arith.constant 0 : index
    %67 = vector.load %arg3[%c0_22, %c0_23, %c0_24] : memref<2x32x32xf32, #tpu.memory_space<vmem>>, vector<1x32x32xf32>
    %68 = vector.shape_cast %67 : vector<1x32x32xf32> to vector<32x32xf32>
    %cst_25 = arith.constant dense<0.000000e+00> : vector<16x32xf32>
    %69 = tpu.matmul %66, %68, %cst_25 {dimension_numbers = #tpu.dot_dimension_numbers<[1], [0], [0], [1], [0, 0, 1, 1], [], []>} : vector<16x32xf32>, vector<32x32xf32>, vector<16x32xf32> -> vector<16x32xf32>
    %70 = arith.addf %0, %69 : vector<16x32xf32>
    %71 = vector.broadcast %6 : vector<1x32xf32> to vector<16x32xf32>
    %72 = arith.addf %70, %71 : vector<16x32xf32>
    %cst_26 = arith.constant dense<0.000000e+00> : vector<16xf32>
    %73 = vector.multi_reduction <add>, %72, %cst_26 [1] : vector<16x32xf32> to vector<16xf32>
    %74 = vector.shape_cast %73 : vector<16xf32> to vector<16x1xf32>
    %cst_27 = arith.constant 3.125000e-02 : f32
    %75 = vector.broadcast %cst_27 : f32 to vector<16x1xf32>
    %76 = arith.mulf %74, %75 : vector<16x1xf32>
    %77 = arith.mulf %72, %72 : vector<16x32xf32>
    %cst_28 = arith.constant dense<0.000000e+00> : vector<16xf32>
    %78 = vector.multi_reduction <add>, %77, %cst_28 [1] : vector<16x32xf32> to vector<16xf32>
    %79 = vector.shape_cast %78 : vector<16xf32> to vector<16x1xf32>
    %cst_29 = arith.constant 3.125000e-02 : f32
    %80 = vector.broadcast %cst_29 : f32 to vector<16x1xf32>
    %81 = arith.mulf %79, %80 : vector<16x1xf32>
    %82 = vector.broadcast %76 : vector<16x1xf32> to vector<16x32xf32>
    %83 = arith.subf %72, %82 : vector<16x32xf32>
    %84 = arith.mulf %76, %76 : vector<16x1xf32>
    %85 = arith.subf %81, %84 : vector<16x1xf32>
    %cst_30 = arith.constant 9.99999974E-6 : f32
    %86 = vector.broadcast %cst_30 : f32 to vector<16x1xf32>
    %87 = arith.addf %85, %86 : vector<16x1xf32>
    %88 = math.rsqrt %87 : vector<16x1xf32>
    %89 = vector.broadcast %88 : vector<16x1xf32> to vector<16x32xf32>
    %90 = arith.mulf %83, %89 : vector<16x32xf32>
    %91 = vector.broadcast %7 : vector<1x32xf32> to vector<16x32xf32>
    %92 = arith.mulf %90, %91 : vector<16x32xf32>
    %93 = vector.broadcast %8 : vector<1x32xf32> to vector<16x32xf32>
    %94 = arith.addf %92, %93 : vector<16x32xf32>
    %c0_31 = arith.constant 0 : index
    %c0_32 = arith.constant 0 : index
    %c0_33 = arith.constant 0 : index
    %95 = vector.load %arg4[%c0_31, %c0_32, %c0_33] : memref<2x32x64xf32, #tpu.memory_space<vmem>>, vector<1x32x64xf32>
    %96 = vector.shape_cast %95 : vector<1x32x64xf32> to vector<32x64xf32>
    %cst_34 = arith.constant dense<0.000000e+00> : vector<16x64xf32>
    %97 = tpu.matmul %94, %96, %cst_34 {dimension_numbers = #tpu.dot_dimension_numbers<[1], [0], [0], [1], [0, 0, 1, 1], [], []>} : vector<16x32xf32>, vector<32x64xf32>, vector<16x64xf32> -> vector<16x64xf32>
    %98 = vector.broadcast %9 : vector<1x64xf32> to vector<16x64xf32>
    %99 = arith.addf %97, %98 : vector<16x64xf32>
    %cst_35 = arith.constant 5.000000e-01 : f32
    %100 = vector.broadcast %cst_35 : f32 to vector<16x64xf32>
    %101 = arith.mulf %100, %99 : vector<16x64xf32>
    %cst_36 = arith.constant 0.707106769 : f32
    %102 = vector.broadcast %cst_36 : f32 to vector<16x64xf32>
    %103 = arith.mulf %99, %102 : vector<16x64xf32>
    %104 = math.erf %103 : vector<16x64xf32>
    %cst_37 = arith.constant 1.000000e+00 : f32
    %105 = vector.broadcast %cst_37 : f32 to vector<16x64xf32>
    %106 = arith.addf %105, %104 : vector<16x64xf32>
    %107 = arith.mulf %101, %106 : vector<16x64xf32>
    %c0_38 = arith.constant 0 : index
    %c0_39 = arith.constant 0 : index
    %c0_40 = arith.constant 0 : index
    %108 = vector.load %arg5[%c0_38, %c0_39, %c0_40] : memref<2x64x32xf32, #tpu.memory_space<vmem>>, vector<1x64x32xf32>
    %109 = vector.shape_cast %108 : vector<1x64x32xf32> to vector<64x32xf32>
    %cst_41 = arith.constant dense<0.000000e+00> : vector<16x32xf32>
    %110 = tpu.matmul %107, %109, %cst_41 {dimension_numbers = #tpu.dot_dimension_numbers<[1], [0], [0], [1], [0, 0, 1, 1], [], []>} : vector<16x64xf32>, vector<64x32xf32>, vector<16x32xf32> -> vector<16x32xf32>
    %111 = arith.addf %72, %110 : vector<16x32xf32>
    %112 = vector.broadcast %10 : vector<1x32xf32> to vector<16x32xf32>
    %113 = arith.addf %111, %112 : vector<16x32xf32>
    %c1 = arith.constant 1 : index
    %c0_42 = arith.constant 0 : index
    %c0_43 = arith.constant 0 : index
    %114 = vector.load %arg6[%c1, %c0_42, %c0_43] : memref<2x8x128xf32, #tpu.memory_space<vmem>>, vector<1x8x128xf32>
    %115 = vector.shape_cast %114 : vector<1x8x128xf32> to vector<8x128xf32>
    %116 = vector.extract_strided_slice %115 {offsets = [0, 0], sizes = [1, 32], strides = [1, 1]} : vector<8x128xf32> to vector<1x32xf32>
    %117 = vector.extract_strided_slice %115 {offsets = [1, 0], sizes = [1, 32], strides = [1, 1]} : vector<8x128xf32> to vector<1x32xf32>
    %118 = vector.extract_strided_slice %115 {offsets = [2, 0], sizes = [1, 32], strides = [1, 1]} : vector<8x128xf32> to vector<1x32xf32>
    %119 = vector.extract_strided_slice %115 {offsets = [3, 0], sizes = [1, 32], strides = [1, 1]} : vector<8x128xf32> to vector<1x32xf32>
    %120 = vector.extract_strided_slice %115 {offsets = [4, 0], sizes = [1, 32], strides = [1, 1]} : vector<8x128xf32> to vector<1x32xf32>
    %121 = vector.extract_strided_slice %115 {offsets = [5, 0], sizes = [1, 64], strides = [1, 1]} : vector<8x128xf32> to vector<1x64xf32>
    %122 = vector.extract_strided_slice %115 {offsets = [6, 0], sizes = [1, 32], strides = [1, 1]} : vector<8x128xf32> to vector<1x32xf32>
    %cst_44 = arith.constant dense<0.000000e+00> : vector<16xf32>
    %123 = vector.multi_reduction <add>, %113, %cst_44 [1] : vector<16x32xf32> to vector<16xf32>
    %124 = vector.shape_cast %123 : vector<16xf32> to vector<16x1xf32>
    %cst_45 = arith.constant 3.125000e-02 : f32
    %125 = vector.broadcast %cst_45 : f32 to vector<16x1xf32>
    %126 = arith.mulf %124, %125 : vector<16x1xf32>
    %127 = arith.mulf %113, %113 : vector<16x32xf32>
    %cst_46 = arith.constant dense<0.000000e+00> : vector<16xf32>
    %128 = vector.multi_reduction <add>, %127, %cst_46 [1] : vector<16x32xf32> to vector<16xf32>
    %129 = vector.shape_cast %128 : vector<16xf32> to vector<16x1xf32>
    %cst_47 = arith.constant 3.125000e-02 : f32
    %130 = vector.broadcast %cst_47 : f32 to vector<16x1xf32>
    %131 = arith.mulf %129, %130 : vector<16x1xf32>
    %132 = vector.broadcast %126 : vector<16x1xf32> to vector<16x32xf32>
    %133 = arith.subf %113, %132 : vector<16x32xf32>
    %134 = arith.mulf %126, %126 : vector<16x1xf32>
    %135 = arith.subf %131, %134 : vector<16x1xf32>
    %cst_48 = arith.constant 9.99999974E-6 : f32
    %136 = vector.broadcast %cst_48 : f32 to vector<16x1xf32>
    %137 = arith.addf %135, %136 : vector<16x1xf32>
    %138 = math.rsqrt %137 : vector<16x1xf32>
    %139 = vector.broadcast %138 : vector<16x1xf32> to vector<16x32xf32>
    %140 = arith.mulf %133, %139 : vector<16x32xf32>
    %141 = vector.broadcast %116 : vector<1x32xf32> to vector<16x32xf32>
    %142 = arith.mulf %140, %141 : vector<16x32xf32>
    %143 = vector.broadcast %117 : vector<1x32xf32> to vector<16x32xf32>
    %144 = arith.addf %142, %143 : vector<16x32xf32>
    %c1_49 = arith.constant 1 : index
    %c0_50 = arith.constant 0 : index
    %c0_51 = arith.constant 0 : index
    %145 = vector.load %arg2[%c1_49, %c0_50, %c0_51] : memref<2x32x96xf32, #tpu.memory_space<vmem>>, vector<1x32x96xf32>
    %146 = vector.shape_cast %145 : vector<1x32x96xf32> to vector<32x96xf32>
    %cst_52 = arith.constant dense<0.000000e+00> : vector<16x96xf32>
    %147 = tpu.matmul %144, %146, %cst_52 {dimension_numbers = #tpu.dot_dimension_numbers<[1], [0], [0], [1], [0, 0, 1, 1], [], []>} : vector<16x32xf32>, vector<32x96xf32>, vector<16x96xf32> -> vector<16x96xf32>
    %148 = vector.extract_strided_slice %147 {offsets = [0, 0], sizes = [16, 16], strides = [1, 1]} : vector<16x96xf32> to vector<16x16xf32>
    %149 = vector.extract_strided_slice %147 {offsets = [0, 32], sizes = [16, 16], strides = [1, 1]} : vector<16x96xf32> to vector<16x16xf32>
    %150 = vector.extract_strided_slice %147 {offsets = [0, 64], sizes = [16, 16], strides = [1, 1]} : vector<16x96xf32> to vector<16x16xf32>
    %cst_53 = arith.constant dense<0.000000e+00> : vector<16x16xf32>
    %151 = tpu.matmul %148, %149, %cst_53 {dimension_numbers = #tpu.dot_dimension_numbers<[1], [1], [0], [0], [0, 0, 1, 0], [], []>} : vector<16x16xf32>, vector<16x16xf32>, vector<16x16xf32> -> vector<16x16xf32>
    %152 = arith.addf %151, %1 : vector<16x16xf32>
    %cst_54 = arith.constant dense<0xFF800000> : vector<16xf32>
    %153 = vector.multi_reduction <maximumf>, %152, %cst_54 [1] : vector<16x16xf32> to vector<16xf32>
    %154 = vector.shape_cast %153 : vector<16xf32> to vector<16x1xf32>
    %155 = vector.broadcast %154 : vector<16x1xf32> to vector<16x16xf32>
    %156 = arith.subf %152, %155 : vector<16x16xf32>
    %157 = math.exp %156 : vector<16x16xf32>
    %cst_55 = arith.constant dense<0.000000e+00> : vector<16xf32>
    %158 = vector.multi_reduction <add>, %157, %cst_55 [1] : vector<16x16xf32> to vector<16xf32>
    %159 = vector.shape_cast %158 : vector<16xf32> to vector<16x1xf32>
    %160 = vector.broadcast %159 : vector<16x1xf32> to vector<16x16xf32>
    %161 = arith.divf %157, %160 : vector<16x16xf32>
    %cst_56 = arith.constant dense<0.000000e+00> : vector<16x16xf32>
    %162 = tpu.matmul %161, %150, %cst_56 {dimension_numbers = #tpu.dot_dimension_numbers<[1], [0], [0], [1], [0, 0, 1, 1], [], []>} : vector<16x16xf32>, vector<16x16xf32>, vector<16x16xf32> -> vector<16x16xf32>
    %163 = vector.extract_strided_slice %147 {offsets = [0, 16], sizes = [16, 16], strides = [1, 1]} : vector<16x96xf32> to vector<16x16xf32>
    %164 = vector.extract_strided_slice %147 {offsets = [0, 48], sizes = [16, 16], strides = [1, 1]} : vector<16x96xf32> to vector<16x16xf32>
    %165 = vector.extract_strided_slice %147 {offsets = [0, 80], sizes = [16, 16], strides = [1, 1]} : vector<16x96xf32> to vector<16x16xf32>
    %cst_57 = arith.constant dense<0.000000e+00> : vector<16x16xf32>
    %166 = tpu.matmul %163, %164, %cst_57 {dimension_numbers = #tpu.dot_dimension_numbers<[1], [1], [0], [0], [0, 0, 1, 0], [], []>} : vector<16x16xf32>, vector<16x16xf32>, vector<16x16xf32> -> vector<16x16xf32>
    %167 = arith.addf %166, %1 : vector<16x16xf32>
    %cst_58 = arith.constant dense<0xFF800000> : vector<16xf32>
    %168 = vector.multi_reduction <maximumf>, %167, %cst_58 [1] : vector<16x16xf32> to vector<16xf32>
    %169 = vector.shape_cast %168 : vector<16xf32> to vector<16x1xf32>
    %170 = vector.broadcast %169 : vector<16x1xf32> to vector<16x16xf32>
    %171 = arith.subf %167, %170 : vector<16x16xf32>
    %172 = math.exp %171 : vector<16x16xf32>
    %cst_59 = arith.constant dense<0.000000e+00> : vector<16xf32>
    %173 = vector.multi_reduction <add>, %172, %cst_59 [1] : vector<16x16xf32> to vector<16xf32>
    %174 = vector.shape_cast %173 : vector<16xf32> to vector<16x1xf32>
    %175 = vector.broadcast %174 : vector<16x1xf32> to vector<16x16xf32>
    %176 = arith.divf %172, %175 : vector<16x16xf32>
    %cst_60 = arith.constant dense<0.000000e+00> : vector<16x16xf32>
    %177 = tpu.matmul %176, %165, %cst_60 {dimension_numbers = #tpu.dot_dimension_numbers<[1], [0], [0], [1], [0, 0, 1, 1], [], []>} : vector<16x16xf32>, vector<16x16xf32>, vector<16x16xf32> -> vector<16x16xf32>
    %178 = tpu.concatenate %162, %177 in 1 : vector<16x16xf32>, vector<16x16xf32> -> vector<16x32xf32>
    %c1_61 = arith.constant 1 : index
    %c0_62 = arith.constant 0 : index
    %c0_63 = arith.constant 0 : index
    %179 = vector.load %arg3[%c1_61, %c0_62, %c0_63] : memref<2x32x32xf32, #tpu.memory_space<vmem>>, vector<1x32x32xf32>
    %180 = vector.shape_cast %179 : vector<1x32x32xf32> to vector<32x32xf32>
    %cst_64 = arith.constant dense<0.000000e+00> : vector<16x32xf32>
    %181 = tpu.matmul %178, %180, %cst_64 {dimension_numbers = #tpu.dot_dimension_numbers<[1], [0], [0], [1], [0, 0, 1, 1], [], []>} : vector<16x32xf32>, vector<32x32xf32>, vector<16x32xf32> -> vector<16x32xf32>
    %182 = arith.addf %113, %181 : vector<16x32xf32>
    %183 = vector.broadcast %118 : vector<1x32xf32> to vector<16x32xf32>
    %184 = arith.addf %182, %183 : vector<16x32xf32>
    %cst_65 = arith.constant dense<0.000000e+00> : vector<16xf32>
    %185 = vector.multi_reduction <add>, %184, %cst_65 [1] : vector<16x32xf32> to vector<16xf32>
    %186 = vector.shape_cast %185 : vector<16xf32> to vector<16x1xf32>
    %cst_66 = arith.constant 3.125000e-02 : f32
    %187 = vector.broadcast %cst_66 : f32 to vector<16x1xf32>
    %188 = arith.mulf %186, %187 : vector<16x1xf32>
    %189 = arith.mulf %184, %184 : vector<16x32xf32>
    %cst_67 = arith.constant dense<0.000000e+00> : vector<16xf32>
    %190 = vector.multi_reduction <add>, %189, %cst_67 [1] : vector<16x32xf32> to vector<16xf32>
    %191 = vector.shape_cast %190 : vector<16xf32> to vector<16x1xf32>
    %cst_68 = arith.constant 3.125000e-02 : f32
    %192 = vector.broadcast %cst_68 : f32 to vector<16x1xf32>
    %193 = arith.mulf %191, %192 : vector<16x1xf32>
    %194 = vector.broadcast %188 : vector<16x1xf32> to vector<16x32xf32>
    %195 = arith.subf %184, %194 : vector<16x32xf32>
    %196 = arith.mulf %188, %188 : vector<16x1xf32>
    %197 = arith.subf %193, %196 : vector<16x1xf32>
    %cst_69 = arith.constant 9.99999974E-6 : f32
    %198 = vector.broadcast %cst_69 : f32 to vector<16x1xf32>
    %199 = arith.addf %197, %198 : vector<16x1xf32>
    %200 = math.rsqrt %199 : vector<16x1xf32>
    %201 = vector.broadcast %200 : vector<16x1xf32> to vector<16x32xf32>
    %202 = arith.mulf %195, %201 : vector<16x32xf32>
    %203 = vector.broadcast %119 : vector<1x32xf32> to vector<16x32xf32>
    %204 = arith.mulf %202, %203 : vector<16x32xf32>
    %205 = vector.broadcast %120 : vector<1x32xf32> to vector<16x32xf32>
    %206 = arith.addf %204, %205 : vector<16x32xf32>
    %c1_70 = arith.constant 1 : index
    %c0_71 = arith.constant 0 : index
    %c0_72 = arith.constant 0 : index
    %207 = vector.load %arg4[%c1_70, %c0_71, %c0_72] : memref<2x32x64xf32, #tpu.memory_space<vmem>>, vector<1x32x64xf32>
    %208 = vector.shape_cast %207 : vector<1x32x64xf32> to vector<32x64xf32>
    %cst_73 = arith.constant dense<0.000000e+00> : vector<16x64xf32>
    %209 = tpu.matmul %206, %208, %cst_73 {dimension_numbers = #tpu.dot_dimension_numbers<[1], [0], [0], [1], [0, 0, 1, 1], [], []>} : vector<16x32xf32>, vector<32x64xf32>, vector<16x64xf32> -> vector<16x64xf32>
    %210 = vector.broadcast %121 : vector<1x64xf32> to vector<16x64xf32>
    %211 = arith.addf %209, %210 : vector<16x64xf32>
    %cst_74 = arith.constant 5.000000e-01 : f32
    %212 = vector.broadcast %cst_74 : f32 to vector<16x64xf32>
    %213 = arith.mulf %212, %211 : vector<16x64xf32>
    %cst_75 = arith.constant 0.707106769 : f32
    %214 = vector.broadcast %cst_75 : f32 to vector<16x64xf32>
    %215 = arith.mulf %211, %214 : vector<16x64xf32>
    %216 = math.erf %215 : vector<16x64xf32>
    %cst_76 = arith.constant 1.000000e+00 : f32
    %217 = vector.broadcast %cst_76 : f32 to vector<16x64xf32>
    %218 = arith.addf %217, %216 : vector<16x64xf32>
    %219 = arith.mulf %213, %218 : vector<16x64xf32>
    %c1_77 = arith.constant 1 : index
    %c0_78 = arith.constant 0 : index
    %c0_79 = arith.constant 0 : index
    %220 = vector.load %arg5[%c1_77, %c0_78, %c0_79] : memref<2x64x32xf32, #tpu.memory_space<vmem>>, vector<1x64x32xf32>
    %221 = vector.shape_cast %220 : vector<1x64x32xf32> to vector<64x32xf32>
    %cst_80 = arith.constant dense<0.000000e+00> : vector<16x32xf32>
    %222 = tpu.matmul %219, %221, %cst_80 {dimension_numbers = #tpu.dot_dimension_numbers<[1], [0], [0], [1], [0, 0, 1, 1], [], []>} : vector<16x64xf32>, vector<64x32xf32>, vector<16x32xf32> -> vector<16x32xf32>
    %223 = arith.addf %184, %222 : vector<16x32xf32>
    %224 = vector.broadcast %122 : vector<1x32xf32> to vector<16x32xf32>
    %225 = arith.addf %223, %224 : vector<16x32xf32>
    %c0_81 = arith.constant 0 : index
    %c0_82 = arith.constant 0 : index
    %226 = vector.load %arg7[%c0_81, %c0_82] : memref<16x32xf32, #tpu.memory_space<vmem>>, vector<16x32xf32>
    tpu.vector_store %arg7[%c0_81, %c0_82], %225 {strides = array<i32>} : memref<16x32xf32, #tpu.memory_space<vmem>>, vector<16x32xf32>,
    return
  }
}

</mosaic_0001>

<bundles_post_ra>
// kernel: forward.1
= control target key start
LH: loop header
LB: loop body
LE: loop exit
PB: predicated region body
PF: predicated region fallthrough
CT: control target
= control target key end

     0   :  { %12 = vsyncpa [#allocation3], 0  ;;  %s2894_s0 = inlined_call_operand.hbm [shape: f32[16,32], index: 0, kind: input, shape index: {}]   ;;  %s2895_s1 = inlined_call_operand.hbm [shape: f32[16,16], index: 1, kind: input, shape index: {}]   ;;  %s2896_s2 = inlined_call_operand.vmem [shape: f32[2,32,96], index: 2, kind: input, shape index: {}]   ;;  %s2897_s3 = inlined_call_operand.vmem [shape: f32[2,32,32], index: 3, kind: input, shape index: {}]   ;;  %s2898_s4 = inlined_call_operand.vmem [shape: f32[2,32,64], index: 4, kind: input, shape index: {}]   ;;  %s2899_s5 = inlined_call_operand.vmem [shape: f32[2,64,32], index: 5, kind: input, shape index: {}]   ;;  %s2900_s6 = inlined_call_operand.vmem [shape: f32[2,8,128], index: 6, kind: input, shape index: {}]   ;;  %s2901_s7 = inlined_call_operand.hbm [shape: f32[16,32], index: 7, kind: output, shape index: {}]  }
   0x1   :  { %13 = vsyncpa [#allocation6], 0 }
   0x2   :  { %14 = vsyncpa [#allocation4], 0  ;;  %s2429_s24 = smov [#allocation2]   ;;  %s2357_s28 = scalar_lea.hbm %s2894_s0, 256 }
   0x3   :  { %s20_s25 = sshll.u32 %s2429_s24, 4  ;;  %p2358_p0 = scmp.ne.s32.totalorder %s2894_s0, %s2357_s28  ;;  %s21_s25 = int_to_ptr.vmem [resolvable:$true] %s20_s25 }
   0x4   :  { %p2361_p1 = scmp.lt.u32.totalorder %s2357_s28, %s2894_s0 }
   0x6   :  { %p2363_p2 = pnand %p2361_p1, %p2358_p0 }
   0x8   :  { %2366 = shalt.err (!%p2363_p2)
}
   0x9   :  { %s2367_s10 = scalar_lea.vmem %s21_s25, 256  ;;  %p2372_p4 = scmp.lt.s32.totalorder %s21_s25, %s21_s25 }
   0xa   :  { %p2368_p3 = scmp.ne.s32.totalorder %s21_s25, %s2367_s10  ;;  %p2373_p5 = scmp.lt.s32.totalorder %s2367_s10, %s2367_s10 }
   0xc   :  { %p2374_p6 = por %p2373_p5, %p2372_p4 }
   0xe   :  { %p2375_p7 = pnand %p2374_p6, %p2368_p3 }
  0x10   :  { %2378 = shalt.err (!%p2375_p7)
}
  0x11   :  { %s2430_s11 = smov 128   ;;  %s2431_s12 = smov 8  }
  0x12   :  { %26 = dma.hbm_to_vmem [thread:$0]  %s2894_s0, 256, %s21_s25, [#allocation3], %s2430_s11, %s2430_s11, %s2431_s12  }
  0x13   :  { %s2432_s15 = smov [#allocation5]   ;;  %s2379_s19 = scalar_lea.hbm %s2895_s1, 256 }
  0x14   :  { %s32_s16 = sshll.u32 %s2432_s15, 4  ;;  %p2380_p8 = scmp.ne.s32.totalorder %s2895_s1, %s2379_s19  ;;  %s33_s16 = int_to_ptr.vmem [resolvable:$true] %s32_s16 }
  0x15   :  { %p2383_p9 = scmp.lt.u32.totalorder %s2379_s19, %s2895_s1 }
  0x17   :  { %p2385_p10 = pnand %p2383_p9, %p2380_p8 }
  0x19   :  { %2388 = shalt.err (!%p2385_p10)
}
  0x1a   :  { %s2389_s24 = scalar_lea.vmem %s33_s16, 256  ;;  %p2394_p12 = scmp.lt.s32.totalorder %s33_s16, %s33_s16 }
  0x1b   :  { %p2390_p11 = scmp.ne.s32.totalorder %s33_s16, %s2389_s24  ;;  %p2395_p13 = scmp.lt.s32.totalorder %s2389_s24, %s2389_s24 }
  0x1d   :  { %p2396_p0 = por %p2395_p13, %p2394_p12 }
  0x1f   :  { %p2397_p1 = pnand %p2396_p0, %p2390_p11 }
  0x21   :  { %2400 = shalt.err (!%p2397_p1)
}
  0x22   :  { %38 = dma.hbm_to_vmem [thread:$0]  %s2895_s1, 256, %s33_s16, [#allocation6], %s2430_s11, %s2430_s11, %s2431_s12  }
  0x23   :  { %2423 = dma.done.wait [#allocation3], 256  }
  0x24   :  { %2424 = vsyncadd [#allocation3], 4294967040 }
  0x25   :  { %2425 = dma.done.wait [#allocation6], 256  }
  0x26   :  { %2426 = vsyncadd [#allocation6], 4294967040  ;;  %vm60_vm0 = vcmask 261120   ;;  %v2510_v0 = vld [vmem:[#allocation2] sm:$0xff]  ;;  %v2512_v1 = vld [vmem:[#allocation2 + $0x8] sm:$0xff]  ;;  %v91_v23 = vlaneseq  ;;  %vm194_vm1 = vcmask 130048  }
  0x27   :  { %v61_v2 = vsel %vm60_vm0, %v2510_v0, 0.0  ;;  %v69_v3 = vmul.f32 %v2510_v0, %v2510_v0  ;;  %v70_v4 = vmul.f32 %v2512_v1, %v2512_v1  ;;  %v64_v6 = vsel %vm60_vm0, %v2512_v1, 0.0  ;;  %v103_v8 = vld [vmem:[%s2896_s2] sm:$0xff]  ;;  %v104_v9 = vld [vmem:[%s2896_s2 + $0x8] sm:$0xff]  ;;  %v105_v10 = vld [vmem:[%s2896_s2 + $0x10] sm:$0xff]  ;;  %s2433_s14 = smov 80  }
  0x28   :  { %62 = vadd.xlane.f32.xlu0 %v61_v2  ;;  %v2130_v11 = vpack.c.bf16 %v104_v9, %v103_v8  ;;  %v106_v12 = vld [vmem:[%s2896_s2 + $0x18] sm:$0xff]  ;;  %v2536_v28 = vshrl.u32 %v91_v23, 7  ;;  %v2542_v31 = vld [vmem:[%s2900_s6] sm:$0xff]  ;;  %s2434_s15 = smov 96   ;;  %s2435_s16 = smov 112   ;;  %vm2566_vm2 = vmpackc.low %vm194_vm1, %vm194_vm1  ;;  %vm839_vm3 = vcmask 523264  }
  0x29   :  { %v71_v5 = vsel %vm60_vm0, %v69_v3, 0.0  ;;  %v74_v7 = vsel %vm60_vm0, %v70_v4, 0.0  ;;  %v2134_v13 = vpack.c.bf16 %v106_v12, %v105_v10  ;;  %v2581_v59 = vld [vmem:[#allocation5 + $0x8] sm:$0xff]  ;;  %v2583_v60 = vld [vmem:[#allocation5] sm:$0xff]  ;;  %s2436_s17 = smov 48   ;;  %s2437_s18 = smov 64  }
  0x2a   :  { %72 = vadd.xlane.f32.xlu1 %v71_v5  ;;  %2131 = vmatprep.subr.bf16.mxu1 %v2130_v11  ;;  %v93_v30 = vsub.s32 0, %v2536_v28  ;;  %v99_v32 = vsub.s32 1, %v2536_v28  ;;  %s2438_s1 = smov 16  }
  0x2b   :  { %2133 = vmatpush3.bf16.msra.mxu1 %v2130_v11 }
  0x2c   :  { %65 = vadd.xlane.f32.xlu0 %v64_v6  ;;  %2135 = vmatprep.subr.bf16.mxu1 %v2134_v13  ;;  %v94_v34 = vrot.slane %v2542_v31, %v93_v30  ;;  %v100_v37 = vrot.slane %v2542_v31, %v99_v32 }
  0x2e   :  { %75 = vadd.xlane.f32.xlu1 %v74_v7 }
  0x2f   :  { %2137 = vmatpush3.bf16.msra.mxu1 %v2134_v13 }
  0xb5   :  { %v63_v14 = vpop.xlane.xlu0 %62 }
  0xb6   :  { %v67_v15 = vmul.f32 0.03125, %v63_v14 }
  0xb7   :  { %v73_v16 = vpop.xlane.xlu1 %72 }
  0xb8   :  { %v81_v17 = vmul.f32 %v67_v15, %v67_v15  ;;  %v77_v18 = vmul.f32 0.03125, %v73_v16  ;;  %v79_v33 = vsub.f32 %v2510_v0, %v67_v15 }
  0xb9   :  { %v66_v19 = vpop.xlane.xlu0 %65 }
  0xba   :  { %v83_v20 = vsub.f32 %v77_v18, %v81_v17  ;;  %v68_v21 = vmul.f32 0.03125, %v66_v19 }
  0xbb   :  { %v76_v22 = vpop.xlane.xlu1 %75 }
  0xbc   :  { %v85_v24 = vadd.f32 1e-05, %v83_v20  ;;  %v82_v25 = vmul.f32 %v68_v21, %v68_v21  ;;  %v78_v26 = vmul.f32 0.03125, %v76_v22  ;;  %v80_v38 = vsub.f32 %v2512_v1, %v68_v21 }
  0xbe   :  { %2301 = vrsqrt.f32 %v85_v24  ;;  %v84_v27 = vsub.f32 %v78_v26, %v82_v25 }
  0xc0   :  { %v86_v29 = vadd.f32 1e-05, %v84_v27 }
  0xc2   :  { %2303 = vrsqrt.f32 %v86_v29 }
  0xc8   :  { %v2302_v35 = vpop.eup %2301 }
  0xc9   :  { %v89_v36 = vmul.f32 %v2302_v35, %v79_v33 }
  0xcb   :  { %v95_v39 = vmul.f32 %v94_v34, %v89_v36 }
  0xcc   :  { %v2304_v40 = vpop.eup %2303 }
  0xcd   :  { %v90_v41 = vmul.f32 %v2304_v40, %v80_v38  ;;  %v101_v42 = vadd.f32 %v100_v37, %v95_v39 }
  0xcf   :  { %v96_v43 = vmul.f32 %v94_v34, %v90_v41  ;;  %1978 = vmatprep.mubr.msk.f32.mxu1 %vm60_vm0, %v101_v42 }
  0xd1   :  { %v102_v44 = vadd.f32 %v100_v37, %v96_v43 }
  0xd3   :  { %1979 = vmatmul.mubr.msk.f32.vlgmr.msra.gmra.mrb[0].mxu1 %vm60_vm0, %v102_v44 }
 0x1a6   :  { %v1980_v45 = vpop.f32.mrb[0].mxu1 }
 0x1a7   :  { %v179_v46 = vpop.f32.mrb[1].mxu1 }
 0x1a8   :  { %1985 = vmatprep.mubr.msk.f32.mxu1 %vm194_vm1, %v179_v46  ;;  %v2556_v47 = vpack.i.bf16 %v1980_v45, %v179_v46 }
 0x1aa   :  { %2267 = vrot.lane.b32.xlu1 %v2556_v47, %s2433_s14  ;;  %2262 = vrot.lane.b32.xlu0 %v2556_v47, %s2434_s15 }
 0x1ae   :  { %387 = vrot.lane.b32.xlu1 %v179_v46, %s2435_s16 }
 0x1b2   :  { %389 = vrot.lane.b32.xlu1 %v1980_v45, %s2435_s16 }
 0x21c   :  { %v2268_v48 = vpop.permute.xlu1 %2267  ;;  %v2263_v49 = vpop.permute.xlu0 %2262 }
 0x21d   :  { %v2270_v50 = vunpack.i.h.bf16 %v2268_v48  ;;  %v2269_v51 = vunpack.i.l.bf16 %v2268_v48  ;;  %v2265_v52 = vunpack.i.h.bf16 %v2263_v49  ;;  %v2264_v53 = vunpack.i.l.bf16 %v2263_v49 }
 0x21f   :  { %v2138_v55 = vpack.c.bf16 %v2265_v52, %v2264_v53  ;;  %v2148_v56 = vpack.c.bf16 %v2270_v50, %v2269_v51 }
 0x220   :  { %v388_v57 = vpop.permute.xlu1 %387 }
 0x221   :  { %2140 = vmatprep.subr.msk.bf16.mxu1 %vm2566_vm2, %v2138_v55 }
 0x222   :  { %2143 = vmatpush3.bf16.xpose.msk.msra.mxu1 %vm2566_vm2, %v2138_v55 }
 0x223   :  { %2150 = vmatprep.subr.msk.bf16.mxu1 %vm2566_vm2, %v2148_v56 }
 0x224   :  { %v390_v58 = vpop.permute.xlu1 %389 }
 0x229   :  { %1986 = vmatmul.mubr.msk.f32.vlgmr.msra.gmra.mrb[2].mxu1 %vm194_vm1, %v1980_v45 }
 0x22a   :  { %2153 = vmatpush3.bf16.xpose.msk.msra.mxu1 %vm2566_vm2, %v2148_v56  ;;  %1999 = vmatprep.mubr.msk.f32.mxu1 %vm194_vm1, %v388_v57  ;;  %v597_v56 = vld [vmem:[%s2897_s3] sm:$0xff]  ;;  %v598_v57 = vld [vmem:[%s2897_s3 + $0x8] sm:$0xff] }
 0x231   :  { %2000 = vmatmul.mubr.msk.f32.vlgmr.msra.gmra.mrb[4].mxu1 %vm194_vm1, %v390_v58  ;;  %v2158_v58 = vpack.c.bf16 %v598_v57, %v597_v56 }
 0x2fc   :  { %v1987_v61 = vpop.f32.mrb[2].mxu1 }
 0x2fd   :  { %v275_v62 = vadd.f32 %v1987_v61, %v2581_v59  ;;  %v269_v63 = vpop.f32.mrb[3].mxu1  ;;  %v599_v61 = vld [vmem:[%s2897_s3 + $0x10] sm:$0xff] }
 0x2fe   :  { %v270_v2 = vadd.f32 %v269_v63, %v2583_v60 }
 0x2ff   :  { %v281_v3 = vsel %vm194_vm1, %v275_v62, -inf }
 0x300   :  { %282 = vmax.xlane.f32.xlu1 %v281_v3  ;;  %v278_v4 = vsel %vm194_vm1, %v270_v2, -inf }
 0x301   :  { %279 = vmax.xlane.f32.xlu0 %v278_v4 }
 0x304   :  { %v2001_v5 = vpop.f32.mrb[4].mxu1 }
 0x305   :  { %v469_v6 = vpop.f32.mrb[5].mxu1  ;;  %v475_v8 = vadd.f32 %v2001_v5, %v2581_v59 }
 0x306   :  { %v470_v7 = vadd.f32 %v469_v6, %v2583_v60 }
 0x307   :  { %v481_v10 = vsel %vm194_vm1, %v475_v8, -inf }
 0x308   :  { %v478_v9 = vsel %vm194_vm1, %v470_v7, -inf }
 0x309   :  { %479 = vmax.xlane.f32.xlu0 %v478_v9 }
 0x30d   :  { %482 = vmax.xlane.f32.xlu0 %v481_v10  ;;  %v686_v10 = vsub.s32 2, %v2536_v28 }
 0x38d   :  { %v283_v11 = vpop.xlane.xlu1 %282 }
 0x38e   :  { %v285_v12 = vsub.f32 %v275_v62, %v283_v11  ;;  %v280_v13 = vpop.xlane.xlu0 %279  ;;  %v600_v62 = vld [vmem:[%s2897_s3 + $0x18] sm:$0xff]  ;;  %v687_v11 = vrot.slane %v2542_v31, %v686_v10 }
 0x38f   :  { %v284_v14 = vsub.f32 %v270_v2, %v280_v13  ;;  %v2162_v63 = vpack.c.bf16 %v600_v62, %v599_v61 }
 0x390   :  { %v288_v15 = vmul.f32 1.442695, %v285_v12 }
 0x391   :  { %v286_v16 = vmul.f32 1.442695, %v284_v14 }
 0x392   :  { %2305 = vpow2.f32 %v288_v15 }
 0x393   :  { %2307 = vpow2.f32 %v286_v16 }
 0x396   :  { %v480_v17 = vpop.xlane.xlu0 %479 }
 0x397   :  { %v484_v18 = vsub.f32 %v470_v7, %v480_v17 }
 0x399   :  { %v486_v19 = vmul.f32 1.442695, %v484_v18 }
 0x39a   :  { %v483_v20 = vpop.xlane.xlu0 %482 }
 0x39b   :  { %2309 = vpow2.f32 %v486_v19  ;;  %v485_v21 = vsub.f32 %v475_v8, %v483_v20 }
 0x39c   :  { %v2306_v22 = vpop.eup %2305 }
 0x39d   :  { %v2308_v23 = vpop.eup %2307  ;;  %v488_v24 = vmul.f32 1.442695, %v485_v21  ;;  %v293_v25 = vsel %vm194_vm1, %v2306_v22, 0.0 }
 0x39e   :  { %294 = vadd.xlane.f32.xlu1 %v293_v25  ;;  %v290_v26 = vsel %vm194_vm1, %v2308_v23, 0.0  ;;  %v734_v25 = vld [vmem:[%s2898_s4 + $0x10] sm:$0xff] }
 0x39f   :  { %2311 = vpow2.f32 %v488_v24  ;;  %291 = vadd.xlane.f32.xlu0 %v290_v26  ;;  %v735_v26 = vld [vmem:[%s2898_s4 + $0x18] sm:$0xff] }
 0x3a5   :  { %v2310_v27 = vpop.eup %2309 }
 0x3a6   :  { %v490_v29 = vsel %vm194_vm1, %v2310_v27, 0.0 }
 0x3a7   :  { %491 = vadd.xlane.f32.xlu0 %v490_v29 }
 0x3a9   :  { %v2312_v33 = vpop.eup %2311 }
 0x3aa   :  { %v493_v34 = vsel %vm194_vm1, %v2312_v33, 0.0 }
 0x3ab   :  { %494 = vadd.xlane.f32.xlu1 %v493_v34 }
 0x3bc   :  { %2277 = vrot.lane.b32.xlu1 %v2556_v47, %s2436_s17 }
 0x3bd   :  { %2272 = vrot.lane.b32.xlu0 %v2556_v47, %s2437_s18 }
 0x42b   :  { %v295_v36 = vpop.xlane.xlu1 %294 }
 0x42c   :  { %v292_v35 = vpop.xlane.xlu0 %291 }
 0x42d   :  { %2313 = vrcp.f32 %v292_v35 }
 0x42e   :  { %2315 = vrcp.f32 %v295_v36 }
 0x434   :  { %v492_v37 = vpop.xlane.xlu0 %491 }
 0x435   :  { %2317 = vrcp.f32 %v492_v37 }
 0x437   :  { %v2314_v38 = vpop.eup %2313 }
 0x438   :  { %v495_v39 = vpop.xlane.xlu1 %494  ;;  %v2273_v40 = vpop.permute.xlu0 %2272  ;;  %v297_v41 = vmul.f32 %v2314_v38, %v2308_v23  ;;  %v733_v23 = vld [vmem:[%s2898_s4 + $0x8] sm:$0xff] }
 0x439   :  { %2319 = vrcp.f32 %v495_v39  ;;  %v2275_v42 = vunpack.i.h.bf16 %v2273_v40  ;;  %v2274_v43 = vunpack.i.l.bf16 %v2273_v40  ;;  %v2316_v45 = vpop.eup %2315 }
 0x43a   :  { %1992 = vmatprep.mubr.msk.f32.mxu0 %vm194_vm1, %v297_v41  ;;  %v299_v51 = vmul.f32 %v2316_v45, %v2306_v22  ;;  %v732_v22 = vld [vmem:[%s2898_s4] sm:$0xff] }
 0x43b   :  { %v2144_v44 = vpack.c.bf16 %v2275_v42, %v2274_v43  ;;  %v2166_v24 = vpack.c.bf16 %v733_v23, %v732_v22 }
 0x43c   :  { %v2278_v46 = vpop.permute.xlu1 %2277 }
 0x43d   :  { %v2280_v48 = vunpack.i.h.bf16 %v2278_v46  ;;  %v2279_v47 = vunpack.i.l.bf16 %v2278_v46  ;;  %2145 = vmatprep.subr.bf16.mxu0 %v2144_v44  ;;  %2167 = vmatprep.subr.bf16.mxu1 %v2166_v24  ;;  %v722_v46 = vsub.s32 3, %v2536_v28 }
 0x43e   :  { %2147 = vmatpush3.bf16.msra.mxu0 %v2144_v44  ;;  %2169 = vmatpush3.bf16.msra.mxu1 %v2166_v24 }
 0x43f   :  { %v2318_v49 = vpop.eup %2317  ;;  %v2154_v50 = vpack.c.bf16 %v2280_v48, %v2279_v47  ;;  %v728_v48 = vsub.s32 4, %v2536_v28 }
 0x440   :  { %v497_v52 = vmul.f32 %v2318_v49, %v2310_v27  ;;  %v2170_v27 = vpack.c.bf16 %v735_v26, %v734_v25  ;;  %v723_v49 = vrot.slane %v2542_v31, %v722_v46 }
 0x441   :  { %1993 = vmatmul.mubr.msk.f32.vlgmr.msra.gmra.mrb[0].mxu0 %vm194_vm1, %v299_v51  ;;  %2155 = vmatprep.subr.bf16.mxu0 %v2154_v50 }
 0x442   :  { %2157 = vmatpush3.bf16.msra.mxu0 %v2154_v50  ;;  %2006 = vmatprep.mubr.msk.f32.mxu0 %vm194_vm1, %v497_v52  ;;  %v729_v52 = vrot.slane %v2542_v31, %v728_v48 }
 0x443   :  { %v2320_v53 = vpop.eup %2319  ;;  %2159 = vmatprep.subr.bf16.mxu0 %v2158_v58  ;;  %2171 = vmatprep.subr.bf16.mxu1 %v2170_v27 }
 0x444   :  { %v499_v55 = vmul.f32 %v2320_v53, %v2312_v33  ;;  %2173 = vmatpush3.bf16.msra.mxu1 %v2170_v27 }
 0x446   :  { %2007 = vmatmul.mubr.msk.f32.vlgmr.msra.gmra.mrb[2].mxu0 %vm194_vm1, %v499_v55 }
 0x447   :  { %2161 = vmatpush3.bf16.msra.mxu0 %v2158_v58 }
 0x448   :  { %2163 = vmatprep.subr.bf16.mxu0 %v2162_v63 }
 0x44b   :  { %2165 = vmatpush3.bf16.msra.mxu0 %v2162_v63  ;;  %v831_v63 = vld [vmem:[%s2899_s5] sm:$0xff] }
 0x514   :  { %v1994_v2 = vpop.f32.mrb[0].mxu0 }
 0x515   :  { %v378_v3 = vpop.f32.mrb[1].mxu0 }
 0x519   :  { %v2008_v4 = vpop.f32.mrb[2].mxu0 }
 0x51a   :  { %v578_v5 = vpop.f32.mrb[3].mxu0 }
 0x51b   :  { %589 = vrot.lane.b32.xlu1 %v578_v5, %s2438_s1  ;;  %v834_v5 = vld [vmem:[%s2899_s5 + $0x18] sm:$0xff] }
 0x51f   :  { %591 = vrot.lane.b32.xlu1 %v2008_v4, %s2438_s1  ;;  %v833_v4 = vld [vmem:[%s2899_s5 + $0x10] sm:$0xff] }
 0x58d   :  { %v590_v6 = vpop.permute.xlu1 %589 }
 0x58e   :  { %v595_v7 = vsel %vm194_vm1, %v378_v3, %v590_v6  ;;  %v2178_v6 = vpack.c.bf16 %v834_v5, %v833_v4 }
 0x58f   :  { %2017 = vmatprep.mubr.msk.f32.mxu0 %vm60_vm0, %v595_v7  ;;  %v835_v7 = vld [vmem:[%s2899_s5 + $0x20] sm:$0xff] }
 0x591   :  { %v592_v8 = vpop.permute.xlu1 %591 }
 0x592   :  { %v596_v9 = vsel %vm194_vm1, %v1994_v2, %v592_v8  ;;  %v832_v2 = vld [vmem:[%s2899_s5 + $0x8] sm:$0xff] }
 0x593   :  { %2018 = vmatmul.mubr.msk.f32.vlgmr.msra.gmra.mrb[4].mxu0 %vm60_vm0, %v596_v9  ;;  %v2174_v3 = vpack.c.bf16 %v832_v2, %v831_v63  ;;  %v836_v8 = vld [vmem:[%s2899_s5 + $0x28] sm:$0xff] }
 0x594   :  { %v2182_v9 = vpack.c.bf16 %v836_v8, %v835_v7  ;;  %v2732_v8 = vld [vmem:[%s2900_s6 + $0x8] sm:$0xff] }
 0x595   :  { %2175 = vmatprep.subr.bf16.mxu0 %v2174_v3 }
 0x596   :  { %2177 = vmatpush3.bf16.msra.mxu0 %v2174_v3 }
 0x597   :  { %2179 = vmatprep.subr.bf16.mxu0 %v2178_v6 }
 0x59a   :  { %2181 = vmatpush3.bf16.msra.mxu0 %v2178_v6 }
 0x59b   :  { %2183 = vmatprep.subr.bf16.mxu0 %v2182_v9 }
 0x59e   :  { %2185 = vmatpush3.bf16.msra.mxu0 %v2182_v9  ;;  %v964_v9 = vrot.slane %v2732_v8, %v93_v30 }
 0x666   :  { %v2019_v12 = vpop.f32.mrb[4].mxu0 }
 0x667   :  { %v683_v13 = vadd.f32 %v2019_v12, %v2512_v1  ;;  %v673_v14 = vpop.f32.mrb[5].mxu0  ;;  %v838_v12 = vld [vmem:[%s2899_s5 + $0x38] sm:$0xff] }
 0x668   :  { %v682_v15 = vadd.f32 %v673_v14, %v2510_v0  ;;  %v738_v14 = vsub.s32 5, %v2536_v28 }
 0x669   :  { %v2629_v16 = vadd.f32 %v687_v11, %v683_v13 }
 0x66a   :  { %v2631_v17 = vadd.f32 %v687_v11, %v682_v15  ;;  %v837_v11 = vld [vmem:[%s2899_s5 + $0x30] sm:$0xff]  ;;  %v739_v15 = vrot.slane %v2542_v31, %v738_v14 }
 0x66b   :  { %v693_v18 = vsel %vm60_vm0, %v2629_v16, 0.0  ;;  %v699_v0 = vmul.f32 %v2629_v16, %v2629_v16  ;;  %v2186_v13 = vpack.c.bf16 %v838_v12, %v837_v11 }
 0x66c   :  { %694 = vadd.xlane.f32.xlu1 %v693_v18  ;;  %v690_v19 = vsel %vm60_vm0, %v2631_v17, 0.0  ;;  %v698_v20 = vmul.f32 %v2631_v17, %v2631_v17 }
 0x66d   :  { %691 = vadd.xlane.f32.xlu0 %v690_v19  ;;  %v703_v21 = vsel %vm60_vm0, %v699_v0, 0.0  ;;  %2187 = vmatprep.subr.bf16.mxu0 %v2186_v13 }
 0x66e   :  { %v700_v1 = vsel %vm60_vm0, %v698_v20, 0.0  ;;  %2189 = vmatpush3.bf16.msra.mxu0 %v2186_v13 }
 0x671   :  { %701 = vadd.xlane.f32.xlu0 %v700_v1 }
 0x675   :  { %704 = vadd.xlane.f32.xlu0 %v703_v21 }
 0x6f9   :  { %v695_v34 = vpop.xlane.xlu1 %694 }
 0x6fa   :  { %v692_v29 = vpop.xlane.xlu0 %691  ;;  %v697_v36 = vmul.f32 0.03125, %v695_v34  ;;  %v925_v34 = vsub.s32 6, %v2536_v28 }
 0x6fb   :  { %v696_v33 = vmul.f32 0.03125, %v692_v29 }
 0x6fc   :  { %v711_v41 = vmul.f32 %v697_v36, %v697_v36  ;;  %v709_v53 = vsub.f32 %v2629_v16, %v697_v36 }
 0x6fd   :  { %v710_v37 = vmul.f32 %v696_v33, %v696_v33  ;;  %v708_v47 = vsub.f32 %v2631_v17, %v696_v33 }
 0x6fe   :  { %v702_v35 = vpop.xlane.xlu0 %701 }
 0x6ff   :  { %v706_v38 = vmul.f32 0.03125, %v702_v35  ;;  %v926_v35 = vrot.slane %v2542_v31, %v925_v34 }
 0x701   :  { %v712_v39 = vsub.f32 %v706_v38, %v710_v37 }
 0x702   :  { %v705_v40 = vpop.xlane.xlu0 %704 }
 0x703   :  { %v714_v42 = vadd.f32 1e-05, %v712_v39  ;;  %v707_v43 = vmul.f32 0.03125, %v705_v40 }
 0x705   :  { %2321 = vrsqrt.f32 %v714_v42  ;;  %v713_v44 = vsub.f32 %v707_v43, %v711_v41 }
 0x707   :  { %v715_v45 = vadd.f32 1e-05, %v713_v44 }
 0x709   :  { %2323 = vrsqrt.f32 %v715_v45  ;;  %v1842_v45 = vld [vmem:[%s2896_s2 + $0x20] sm:$0xff] }
 0x70f   :  { %v2322_v50 = vpop.eup %2321 }
 0x710   :  { %v718_v51 = vmul.f32 %v2322_v50, %v708_v47  ;;  %v1843_v47 = vld [vmem:[%s2896_s2 + $0x28] sm:$0xff]  ;;  %v1844_v50 = vld [vmem:[%s2896_s2 + $0x30] sm:$0xff] }
 0x712   :  { %v724_v55 = vmul.f32 %v723_v49, %v718_v51  ;;  %v1845_v51 = vld [vmem:[%s2896_s2 + $0x38] sm:$0xff] }
 0x713   :  { %v2324_v56 = vpop.eup %2323 }
 0x714   :  { %v719_v57 = vmul.f32 %v2324_v56, %v709_v53  ;;  %v730_v58 = vadd.f32 %v729_v52, %v724_v55 }
 0x716   :  { %v725_v61 = vmul.f32 %v723_v49, %v719_v57  ;;  %2028 = vmatprep.mubr.msk.f32.mxu1 %vm60_vm0, %v730_v58  ;;  %v2190_v49 = vpack.c.bf16 %v1843_v47, %v1842_v45 }
 0x718   :  { %v731_v62 = vadd.f32 %v729_v52, %v725_v61  ;;  %2191 = vmatprep.subr.bf16.mxu1 %v2190_v49  ;;  %v2194_v52 = vpack.c.bf16 %v1845_v51, %v1844_v50 }
 0x71a   :  { %2029 = vmatmul.mubr.msk.f32.vlgmr.msra.gmra.mrb[6].mxu1 %vm60_vm0, %v731_v62 }
 0x71b   :  { %2193 = vmatpush3.bf16.msra.mxu1 %v2190_v49 }
 0x71c   :  { %2195 = vmatprep.subr.bf16.mxu1 %v2194_v52 }
 0x71f   :  { %2197 = vmatpush3.bf16.msra.mxu1 %v2194_v52 }
 0x7ed   :  { %v2030_v18 = vpop.f32.mrb[6].mxu1 }
 0x7ee   :  { %v818_v19 = vadd.f32 %v2030_v18, %v739_v15  ;;  %v812_v20 = vpop.f32.mrb[7].mxu1  ;;  %v970_v18 = vrot.slane %v2732_v8, %v99_v32 }
 0x7ef   :  { %v813_v1 = vadd.f32 %v812_v20, %v739_v15 }
 0x7f0   :  { %v824_v0 = vmul.f32 0.70710677, %v818_v19  ;;  %v822_v27 = vmul.f32 0.5, %v818_v19 }
 0x7f1   :  { %v823_v21 = vmul.f32 0.70710677, %v813_v1  ;;  %v821_v25 = vmul.f32 0.5, %v813_v1 }
 0x7f2   :  { %2325 = verf.f32 %v824_v0 }
 0x7f3   :  { %2327 = verf.f32 %v823_v21 }
 0x7fc   :  { %v2326_v22 = vpop.eup %2325 }
 0x7fd   :  { %v2328_v23 = vpop.eup %2327  ;;  %v828_v24 = vadd.f32 1.0, %v2326_v22 }
 0x7fe   :  { %v827_v26 = vadd.f32 1.0, %v2328_v23 }
 0x7ff   :  { %v830_v33 = vmul.f32 %v828_v24, %v822_v27 }
 0x800   :  { %v829_v29 = vmul.f32 %v827_v26, %v821_v25 }
 0x802   :  { %2047 = vmatprep.mubr.msk.f32.mxu0 %vm839_vm3, %v829_v29 }
 0x803   :  { %2048 = vmatmul.mubr.msk.f32.vlgmr.msra.gmra.mrb[6].mxu0 %vm839_vm3, %v830_v33 }
 0x8d6   :  { %v2049_v36 = vpop.f32.mrb[6].mxu0 }
 0x8d7   :  { %v922_v37 = vadd.f32 %v2049_v36, %v2629_v16  ;;  %v912_v38 = vpop.f32.mrb[7].mxu0 }
 0x8d8   :  { %v921_v39 = vadd.f32 %v912_v38, %v2631_v17 }
 0x8d9   :  { %v2703_v40 = vadd.f32 %v926_v35, %v922_v37 }
 0x8da   :  { %v2705_v41 = vadd.f32 %v926_v35, %v921_v39 }
 0x8db   :  { %v934_v42 = vsel %vm60_vm0, %v2703_v40, 0.0  ;;  %v940_v43 = vmul.f32 %v2703_v40, %v2703_v40 }
 0x8dc   :  { %935 = vadd.xlane.f32.xlu1 %v934_v42  ;;  %v931_v31 = vsel %vm60_vm0, %v2705_v41, 0.0  ;;  %v939_v16 = vmul.f32 %v2705_v41, %v2705_v41 }
 0x8dd   :  { %932 = vadd.xlane.f32.xlu0 %v931_v31  ;;  %v944_v17 = vsel %vm60_vm0, %v940_v43, 0.0 }
 0x8de   :  { %v941_v44 = vsel %vm60_vm0, %v939_v16, 0.0 }
 0x8e0   :  { %945 = vadd.xlane.f32.xlu1 %v944_v17 }
 0x8e1   :  { %942 = vadd.xlane.f32.xlu0 %v941_v44 }
 0x969   :  { %v936_v53 = vpop.xlane.xlu1 %935 }
 0x96a   :  { %v938_v55 = vmul.f32 0.03125, %v936_v53  ;;  %v933_v56 = vpop.xlane.xlu0 %932 }
 0x96b   :  { %v937_v57 = vmul.f32 0.03125, %v933_v56 }
 0x96c   :  { %v952_v61 = vmul.f32 %v938_v55, %v938_v55  ;;  %v950_v11 = vsub.f32 %v2703_v40, %v938_v55 }
 0x96d   :  { %v946_v58 = vpop.xlane.xlu1 %945  ;;  %v951_v2 = vmul.f32 %v937_v57, %v937_v57  ;;  %v949_v13 = vsub.f32 %v2705_v41, %v937_v57 }
 0x96e   :  { %v948_v62 = vmul.f32 0.03125, %v946_v58  ;;  %v943_v63 = vpop.xlane.xlu0 %942 }
 0x96f   :  { %v947_v3 = vmul.f32 0.03125, %v943_v63 }
 0x970   :  { %v954_v4 = vsub.f32 %v948_v62, %v952_v61 }
 0x971   :  { %v953_v5 = vsub.f32 %v947_v3, %v951_v2 }
 0x972   :  { %v956_v6 = vadd.f32 1e-05, %v954_v4 }
 0x973   :  { %v955_v7 = vadd.f32 1e-05, %v953_v5 }
 0x974   :  { %2329 = vrsqrt.f32 %v956_v6 }
 0x975   :  { %2331 = vrsqrt.f32 %v955_v7 }
 0x97e   :  { %v2330_v12 = vpop.eup %2329 }
 0x97f   :  { %v2332_v15 = vpop.eup %2331  ;;  %v960_v19 = vmul.f32 %v2330_v12, %v950_v11 }
 0x980   :  { %v959_v20 = vmul.f32 %v2332_v15, %v949_v13 }
 0x981   :  { %v966_v1 = vmul.f32 %v964_v9, %v960_v19 }
 0x982   :  { %v965_v0 = vmul.f32 %v964_v9, %v959_v20 }
 0x983   :  { %v972_v21 = vadd.f32 %v970_v18, %v966_v1 }
 0x984   :  { %v971_v22 = vadd.f32 %v970_v18, %v965_v0 }
 0x986   :  { %2058 = vmatprep.mubr.msk.f32.mxu1 %vm60_vm0, %v971_v22 }
 0x987   :  { %2059 = vmatmul.mubr.msk.f32.vlgmr.msra.gmra.mrb[8].mxu1 %vm60_vm0, %v972_v21 }
 0xa5a   :  { %v2060_v30 = vpop.f32.mrb[8].mxu1 }
 0xa5b   :  { %v1050_v23 = vpop.f32.mrb[9].mxu1 }
 0xa5c   :  { %2065 = vmatprep.mubr.msk.f32.mxu1 %vm194_vm1, %v1050_v23  ;;  %v2745_v24 = vpack.i.bf16 %v2060_v30, %v1050_v23 }
 0xa5e   :  { %2287 = vrot.lane.b32.xlu1 %v2745_v24, %s2433_s14  ;;  %2282 = vrot.lane.b32.xlu0 %v2745_v24, %s2434_s15 }
 0xa62   :  { %1257 = vrot.lane.b32.xlu1 %v1050_v23, %s2435_s16 }
 0xa66   :  { %1259 = vrot.lane.b32.xlu1 %v2060_v30, %s2435_s16 }
 0xad0   :  { %v2288_v32 = vpop.permute.xlu1 %2287  ;;  %v2283_v25 = vpop.permute.xlu0 %2282 }
 0xad1   :  { %v2290_v26 = vunpack.i.h.bf16 %v2288_v32  ;;  %v2289_v27 = vunpack.i.l.bf16 %v2288_v32  ;;  %v2285_v29 = vunpack.i.h.bf16 %v2283_v25  ;;  %v2284_v33 = vunpack.i.l.bf16 %v2283_v25 }
 0xad3   :  { %v2198_v35 = vpack.c.bf16 %v2285_v29, %v2284_v33  ;;  %v2208_v36 = vpack.c.bf16 %v2290_v26, %v2289_v27 }
 0xad4   :  { %v1258_v37 = vpop.permute.xlu1 %1257 }
 0xad5   :  { %2200 = vmatprep.subr.msk.bf16.mxu1 %vm2566_vm2, %v2198_v35 }
 0xad6   :  { %2203 = vmatpush3.bf16.xpose.msk.msra.mxu1 %vm2566_vm2, %v2198_v35 }
 0xad7   :  { %2210 = vmatprep.subr.msk.bf16.mxu1 %vm2566_vm2, %v2208_v36 }
 0xad8   :  { %v1260_v38 = vpop.permute.xlu1 %1259 }
 0xadd   :  { %2066 = vmatmul.mubr.msk.f32.vlgmr.msra.gmra.mrb[10].mxu1 %vm194_vm1, %v2060_v30 }
 0xade   :  { %2213 = vmatpush3.bf16.xpose.msk.msra.mxu1 %vm2566_vm2, %v2208_v36  ;;  %2079 = vmatprep.mubr.msk.f32.mxu1 %vm194_vm1, %v1258_v37  ;;  %v1860_v36 = vld [vmem:[%s2897_s3 + $0x20] sm:$0xff]  ;;  %v1861_v37 = vld [vmem:[%s2897_s3 + $0x28] sm:$0xff] }
 0xae5   :  { %2080 = vmatmul.mubr.msk.f32.vlgmr.msra.gmra.mrb[12].mxu1 %vm194_vm1, %v1260_v38  ;;  %v2218_v38 = vpack.c.bf16 %v1861_v37, %v1860_v36 }
 0xbb0   :  { %v2067_v39 = vpop.f32.mrb[10].mxu1 }
 0xbb1   :  { %v1145_v42 = vadd.f32 %v2067_v39, %v2581_v59  ;;  %v1139_v43 = vpop.f32.mrb[11].mxu1  ;;  %v1862_v39 = vld [vmem:[%s2897_s3 + $0x30] sm:$0xff] }
 0xbb2   :  { %v1140_v31 = vadd.f32 %v1139_v43, %v2583_v60 }
 0xbb3   :  { %v1151_v16 = vsel %vm194_vm1, %v1145_v42, -inf }
 0xbb4   :  { %1152 = vmax.xlane.f32.xlu1 %v1151_v16  ;;  %v1148_v17 = vsel %vm194_vm1, %v1140_v31, -inf }
 0xbb5   :  { %1149 = vmax.xlane.f32.xlu0 %v1148_v17 }
 0xbb8   :  { %v2081_v44 = vpop.f32.mrb[12].mxu1 }
 0xbb9   :  { %v1339_v54 = vpop.f32.mrb[13].mxu1  ;;  %v1345_v47 = vadd.f32 %v2081_v44, %v2581_v59 }
 0xbba   :  { %v1340_v45 = vadd.f32 %v1339_v54, %v2583_v60 }
 0xbbb   :  { %v1351_v50 = vsel %vm194_vm1, %v1345_v47, -inf }
 0xbbc   :  { %v1348_v49 = vsel %vm194_vm1, %v1340_v45, -inf }
 0xbbd   :  { %1349 = vmax.xlane.f32.xlu0 %v1348_v49 }
 0xbc1   :  { %1352 = vmax.xlane.f32.xlu0 %v1351_v50  ;;  %v1558_v50 = vrot.slane %v2732_v8, %v686_v10 }
 0xc41   :  { %v1153_v51 = vpop.xlane.xlu1 %1152 }
 0xc42   :  { %v1155_v52 = vsub.f32 %v1145_v42, %v1153_v51  ;;  %v1150_v53 = vpop.xlane.xlu0 %1149  ;;  %v1863_v42 = vld [vmem:[%s2897_s3 + $0x38] sm:$0xff] }
 0xc43   :  { %v1154_v55 = vsub.f32 %v1140_v31, %v1150_v53  ;;  %v2222_v43 = vpack.c.bf16 %v1863_v42, %v1862_v39  ;;  %v1875_v39 = vld [vmem:[%s2899_s5 + $0x58] sm:$0xff] }
 0xc44   :  { %v1158_v56 = vmul.f32 1.442695, %v1155_v52 }
 0xc45   :  { %v1156_v57 = vmul.f32 1.442695, %v1154_v55 }
 0xc46   :  { %2333 = vpow2.f32 %v1158_v56 }
 0xc47   :  { %2335 = vpow2.f32 %v1156_v57 }
 0xc4a   :  { %v1350_v58 = vpop.xlane.xlu0 %1349 }
 0xc4b   :  { %v1354_v61 = vsub.f32 %v1340_v45, %v1350_v58 }
 0xc4d   :  { %v1356_v62 = vmul.f32 1.442695, %v1354_v61 }
 0xc4e   :  { %v1353_v60 = vpop.xlane.xlu0 %1352 }
 0xc4f   :  { %2337 = vpow2.f32 %v1356_v62  ;;  %v1355_v59 = vsub.f32 %v1345_v47, %v1353_v60  ;;  %v1866_v60 = vld [vmem:[%s2898_s4 + $0x20] sm:$0xff] }
 0xc50   :  { %v2334_v63 = vpop.eup %2333 }
 0xc51   :  { %v2336_v2 = vpop.eup %2335  ;;  %v1358_v3 = vmul.f32 1.442695, %v1355_v59  ;;  %v1163_v4 = vsel %vm194_vm1, %v2334_v63, 0.0  ;;  %v1867_v59 = vld [vmem:[%s2898_s4 + $0x28] sm:$0xff] }
 0xc52   :  { %1164 = vadd.xlane.f32.xlu1 %v1163_v4  ;;  %v1160_v5 = vsel %vm194_vm1, %v2336_v2, 0.0 }
 0xc53   :  { %2339 = vpow2.f32 %v1358_v3  ;;  %1161 = vadd.xlane.f32.xlu0 %v1160_v5  ;;  %v1869_v3 = vld [vmem:[%s2898_s4 + $0x38] sm:$0xff] }
 0xc59   :  { %v2338_v6 = vpop.eup %2337 }
 0xc5a   :  { %v1360_v7 = vsel %vm194_vm1, %v2338_v6, 0.0 }
 0xc5b   :  { %1361 = vadd.xlane.f32.xlu0 %v1360_v7 }
 0xc5d   :  { %v2340_v9 = vpop.eup %2339 }
 0xc5e   :  { %v1363_v11 = vsel %vm194_vm1, %v2340_v9, 0.0 }
 0xc5f   :  { %1364 = vadd.xlane.f32.xlu1 %v1363_v11 }
 0xc70   :  { %2297 = vrot.lane.b32.xlu1 %v2745_v24, %s2436_s17 }
 0xc71   :  { %2292 = vrot.lane.b32.xlu0 %v2745_v24, %s2437_s18 }
 0xcdf   :  { %v1165_v13 = vpop.xlane.xlu1 %1164 }
 0xce0   :  { %v1162_v12 = vpop.xlane.xlu0 %1161 }
 0xce1   :  { %2341 = vrcp.f32 %v1162_v12 }
 0xce2   :  { %2343 = vrcp.f32 %v1165_v13 }
 0xce8   :  { %v1362_v15 = vpop.xlane.xlu0 %1361 }
 0xce9   :  { %2345 = vrcp.f32 %v1362_v15 }
 0xceb   :  { %v2342_v18 = vpop.eup %2341 }
 0xcec   :  { %v1365_v19 = vpop.xlane.xlu1 %1364  ;;  %v2293_v20 = vpop.permute.xlu0 %2292  ;;  %v1167_v1 = vmul.f32 %v2342_v18, %v2336_v2  ;;  %v1868_v2 = vld [vmem:[%s2898_s4 + $0x30] sm:$0xff] }
 0xced   :  { %2347 = vrcp.f32 %v1365_v19  ;;  %v2295_v0 = vunpack.i.h.bf16 %v2293_v20  ;;  %v2294_v21 = vunpack.i.l.bf16 %v2293_v20  ;;  %v2344_v30 = vpop.eup %2343  ;;  %v2230_v4 = vpack.c.bf16 %v1869_v3, %v1868_v2 }
 0xcee   :  { %2072 = vmatprep.mubr.msk.f32.mxu0 %vm194_vm1, %v1167_v1  ;;  %v1169_v26 = vmul.f32 %v2344_v30, %v2334_v63  ;;  %v2226_v63 = vpack.c.bf16 %v1867_v59, %v1866_v60  ;;  %v1594_v30 = vrot.slane %v2732_v8, %v722_v46  ;;  %v1872_v46 = vld [vmem:[%s2899_s5 + $0x40] sm:$0xff] }
 0xcef   :  { %v2204_v22 = vpack.c.bf16 %v2295_v0, %v2294_v21 }
 0xcf0   :  { %v2298_v23 = vpop.permute.xlu1 %2297  ;;  %2227 = vmatprep.subr.bf16.mxu1 %v2226_v63 }
 0xcf1   :  { %v2300_v32 = vunpack.i.h.bf16 %v2298_v23  ;;  %v2299_v24 = vunpack.i.l.bf16 %v2298_v23  ;;  %2205 = vmatprep.subr.bf16.mxu0 %v2204_v22  ;;  %2229 = vmatpush3.bf16.msra.mxu1 %v2226_v63 }
 0xcf2   :  { %2207 = vmatpush3.bf16.msra.mxu0 %v2204_v22  ;;  %2231 = vmatprep.subr.bf16.mxu1 %v2230_v4 }
 0xcf3   :  { %v2346_v25 = vpop.eup %2345  ;;  %v2214_v27 = vpack.c.bf16 %v2300_v32, %v2299_v24  ;;  %v1600_v24 = vrot.slane %v2732_v8, %v728_v48  ;;  %v1873_v48 = vld [vmem:[%s2899_s5 + $0x48] sm:$0xff] }
 0xcf4   :  { %v1367_v29 = vmul.f32 %v2346_v25, %v2338_v6  ;;  %v2234_v37 = vpack.c.bf16 %v1873_v48, %v1872_v46 }
 0xcf5   :  { %2073 = vmatmul.mubr.msk.f32.vlgmr.msra.gmra.mrb[8].mxu0 %vm194_vm1, %v1169_v26  ;;  %2215 = vmatprep.subr.bf16.mxu0 %v2214_v27 }
 0xcf6   :  { %2217 = vmatpush3.bf16.msra.mxu0 %v2214_v27  ;;  %2086 = vmatprep.mubr.msk.f32.mxu0 %vm194_vm1, %v1367_v29 }
 0xcf7   :  { %v2348_v33 = vpop.eup %2347  ;;  %2219 = vmatprep.subr.bf16.mxu0 %v2218_v38  ;;  %2233 = vmatpush3.bf16.msra.mxu1 %v2230_v4 }
 0xcf8   :  { %v1369_v35 = vmul.f32 %v2348_v33, %v2340_v9 }
 0xcfa   :  { %2087 = vmatmul.mubr.msk.f32.vlgmr.msra.gmra.mrb[10].mxu0 %vm194_vm1, %v1369_v35 }
 0xcfb   :  { %2221 = vmatpush3.bf16.msra.mxu0 %v2218_v38  ;;  %v1874_v38 = vld [vmem:[%s2899_s5 + $0x50] sm:$0xff] }
 0xcfc   :  { %2223 = vmatprep.subr.bf16.mxu0 %v2222_v43  ;;  %v2238_v42 = vpack.c.bf16 %v1875_v39, %v1874_v38 }
 0xcff   :  { %2225 = vmatpush3.bf16.msra.mxu0 %v2222_v43  ;;  %v1876_v43 = vld [vmem:[%s2899_s5 + $0x60] sm:$0xff] }
 0xd00   :  { %2235 = vmatprep.subr.bf16.mxu0 %v2234_v37 }
 0xdc8   :  { %v2074_v31 = vpop.f32.mrb[8].mxu0 }
 0xdc9   :  { %v1248_v16 = vpop.f32.mrb[9].mxu0 }
 0xdcd   :  { %v2088_v17 = vpop.f32.mrb[10].mxu0 }
 0xdce   :  { %v1448_v44 = vpop.f32.mrb[11].mxu0 }
 0xdcf   :  { %1459 = vrot.lane.b32.xlu1 %v1448_v44, %s2438_s1  ;;  %v1879_v44 = vld [vmem:[%s2899_s5 + $0x78] sm:$0xff] }
 0xdd3   :  { %1461 = vrot.lane.b32.xlu1 %v2088_v17, %s2438_s1  ;;  %v1878_v17 = vld [vmem:[%s2899_s5 + $0x70] sm:$0xff] }
 0xe41   :  { %v1460_v54 = vpop.permute.xlu1 %1459 }
 0xe42   :  { %v1465_v45 = vsel %vm194_vm1, %v1248_v16, %v1460_v54  ;;  %v2246_v54 = vpack.c.bf16 %v1879_v44, %v1878_v17 }
 0xe43   :  { %2097 = vmatprep.mubr.msk.f32.mxu0 %vm60_vm0, %v1465_v45  ;;  %v1611_v45 = vrot.slane %v2732_v8, %v738_v14  ;;  %v1798_v14 = vrot.slane %v2732_v8, %v925_v34 }
 0xe45   :  { %v1462_v47 = vpop.permute.xlu1 %1461 }
 0xe46   :  { %v1466_v49 = vsel %vm194_vm1, %v2074_v31, %v1462_v47  ;;  %v1877_v31 = vld [vmem:[%s2899_s5 + $0x68] sm:$0xff]  ;;  %s2439_s5 = smov [#allocation7]  }
 0xe47   :  { %2098 = vmatmul.mubr.msk.f32.vlgmr.msra.gmra.mrb[12].mxu0 %vm60_vm0, %v1466_v49  ;;  %v2242_v16 = vpack.c.bf16 %v1877_v31, %v1876_v43  ;;  %s1808_s18 = sshll.u32 %s2439_s5, 4  ;;  %s1809_s18 = int_to_ptr.vmem [resolvable:$true] %s1808_s18 }
 0xe48   :  { %2237 = vmatpush3.bf16.msra.mxu0 %v2234_v37  ;;  %s2401_s25 = scalar_lea.vmem %s1809_s18, 256  ;;  %p2406_p3 = scmp.lt.s32.totalorder %s1809_s18, %s1809_s18 }
 0xe49   :  { %2239 = vmatprep.subr.bf16.mxu0 %v2238_v42  ;;  %p2402_p2 = scmp.ne.s32.totalorder %s1809_s18, %s2401_s25  ;;  %p2407_p4 = scmp.lt.s32.totalorder %s2401_s25, %s2401_s25 }
 0xe4b   :  { %p2408_p5 = por %p2407_p4, %p2406_p3 }
 0xe4c   :  { %2241 = vmatpush3.bf16.msra.mxu0 %v2238_v42 }
 0xe4d   :  { %2243 = vmatprep.subr.bf16.mxu0 %v2242_v16  ;;  %p2409_p6 = pnand %p2408_p5, %p2402_p2 }
 0xe50   :  { %2245 = vmatpush3.bf16.msra.mxu0 %v2242_v16 }
 0xe51   :  { %2247 = vmatprep.subr.bf16.mxu0 %v2246_v54 }
 0xe54   :  { %2249 = vmatpush3.bf16.msra.mxu0 %v2246_v54 }
 0xf1a   :  { %v2099_v51 = vpop.f32.mrb[12].mxu0 }
 0xf1b   :  { %v1554_v52 = vadd.f32 %v2099_v51, %v2703_v40  ;;  %v1544_v53 = vpop.f32.mrb[13].mxu0 }
 0xf1c   :  { %v1553_v55 = vadd.f32 %v1544_v53, %v2705_v41 }
 0xf1d   :  { %v2807_v56 = vadd.f32 %v1558_v50, %v1554_v52 }
 0xf1e   :  { %v2809_v57 = vadd.f32 %v1558_v50, %v1553_v55 }
 0xf1f   :  { %v1564_v58 = vsel %vm60_vm0, %v2807_v56, 0.0  ;;  %v1570_v41 = vmul.f32 %v2807_v56, %v2807_v56 }
 0xf20   :  { %1565 = vadd.xlane.f32.xlu1 %v1564_v58  ;;  %v1561_v61 = vsel %vm60_vm0, %v2809_v57, 0.0  ;;  %v1569_v10 = vmul.f32 %v2809_v57, %v2809_v57 }
 0xf21   :  { %1562 = vadd.xlane.f32.xlu0 %v1561_v61  ;;  %v1574_v62 = vsel %vm60_vm0, %v1570_v41, 0.0 }
 0xf22   :  { %v1571_v40 = vsel %vm60_vm0, %v1569_v10, 0.0 }
 0xf25   :  { %1572 = vadd.xlane.f32.xlu0 %v1571_v40 }
 0xf29   :  { %1575 = vadd.xlane.f32.xlu0 %v1574_v62 }
 0xfad   :  { %v1566_v7 = vpop.xlane.xlu1 %1565 }
 0xfae   :  { %v1563_v5 = vpop.xlane.xlu0 %1562  ;;  %v1568_v11 = vmul.f32 0.03125, %v1566_v7 }
 0xfaf   :  { %v1567_v6 = vmul.f32 0.03125, %v1563_v5 }
 0xfb0   :  { %v1582_v19 = vmul.f32 %v1568_v11, %v1568_v11  ;;  %v1580_v25 = vsub.f32 %v2807_v56, %v1568_v11 }
 0xfb1   :  { %v1581_v12 = vmul.f32 %v1567_v6, %v1567_v6  ;;  %v1579_v22 = vsub.f32 %v2809_v57, %v1567_v6 }
 0xfb2   :  { %v1573_v9 = vpop.xlane.xlu0 %1572 }
 0xfb3   :  { %v1577_v13 = vmul.f32 0.03125, %v1573_v9 }
 0xfb5   :  { %v1583_v15 = vsub.f32 %v1577_v13, %v1581_v12 }
 0xfb6   :  { %v1576_v18 = vpop.xlane.xlu0 %1575 }
 0xfb7   :  { %v1585_v20 = vadd.f32 1e-05, %v1583_v15  ;;  %v1578_v1 = vmul.f32 0.03125, %v1576_v18 }
 0xfb9   :  { %2349 = vrsqrt.f32 %v1585_v20  ;;  %v1584_v0 = vsub.f32 %v1578_v1, %v1582_v19 }
 0xfbb   :  { %v1586_v21 = vadd.f32 1e-05, %v1584_v0 }
 0xfbd   :  { %2351 = vrsqrt.f32 %v1586_v21 }
 0xfc3   :  { %v2350_v23 = vpop.eup %2349 }
 0xfc4   :  { %v1589_v32 = vmul.f32 %v2350_v23, %v1579_v22 }
 0xfc6   :  { %v1595_v26 = vmul.f32 %v1594_v30, %v1589_v32 }
 0xfc7   :  { %v2352_v27 = vpop.eup %2351 }
 0xfc8   :  { %v1590_v29 = vmul.f32 %v2352_v27, %v1580_v25  ;;  %v1601_v33 = vadd.f32 %v1600_v24, %v1595_v26 }
 0xfca   :  { %v1596_v35 = vmul.f32 %v1594_v30, %v1590_v29  ;;  %2108 = vmatprep.mubr.msk.f32.mxu1 %vm60_vm0, %v1601_v33 }
 0xfcc   :  { %v1602_v36 = vadd.f32 %v1600_v24, %v1596_v35 }
 0xfce   :  { %2109 = vmatmul.mubr.msk.f32.vlgmr.msra.gmra.mrb[14].mxu1 %vm60_vm0, %v1602_v36 }
0x10a1   :  { %v2110_v47 = vpop.f32.mrb[14].mxu1 }
0x10a2   :  { %v1690_v49 = vadd.f32 %v2110_v47, %v1611_v45  ;;  %v1684_v50 = vpop.f32.mrb[15].mxu1 }
0x10a3   :  { %v1685_v51 = vadd.f32 %v1684_v50, %v1611_v45 }
0x10a4   :  { %v1696_v52 = vmul.f32 0.70710677, %v1690_v49  ;;  %v1694_v41 = vmul.f32 0.5, %v1690_v49 }
0x10a5   :  { %v1695_v53 = vmul.f32 0.70710677, %v1685_v51  ;;  %v1693_v10 = vmul.f32 0.5, %v1685_v51 }
0x10a6   :  { %2353 = verf.f32 %v1696_v52 }
0x10a7   :  { %2355 = verf.f32 %v1695_v53 }
0x10b0   :  { %v2354_v55 = vpop.eup %2353 }
0x10b1   :  { %v2356_v58 = vpop.eup %2355  ;;  %v1700_v61 = vadd.f32 1.0, %v2354_v55 }
0x10b2   :  { %v1699_v40 = vadd.f32 1.0, %v2356_v58 }
0x10b3   :  { %v1702_v60 = vmul.f32 %v1700_v61, %v1694_v41 }
0x10b4   :  { %v1701_v62 = vmul.f32 %v1699_v40, %v1693_v10 }
0x10b6   :  { %2127 = vmatprep.mubr.msk.f32.mxu0 %vm839_vm3, %v1701_v62 }
0x10b7   :  { %2128 = vmatmul.mubr.msk.f32.vlgmr.msra.gmra.mrb[14].mxu0 %vm839_vm3, %v1702_v60 }
0x118a   :  { %v2129_v59 = vpop.f32.mrb[14].mxu0 }
0x118b   :  { %v1794_v63 = vadd.f32 %v2129_v59, %v2807_v56  ;;  %v1784_v2 = vpop.f32.mrb[15].mxu0 }
0x118c   :  { %v1793_v3 = vadd.f32 %v1784_v2, %v2809_v57 }
0x118d   :  { %v1800_v4 = vadd.f32 %v1798_v14, %v1794_v63 }
0x118e   :  { %v1799_v5 = vadd.f32 %v1798_v14, %v1793_v3 }
0x118f   :  { %1802 = vst.msk [vmem:[#allocation7 + $0x8] sm:$0xff] %vm60_vm0, %v1800_v4 }
0x1190   :  { %1801 = vst.msk [vmem:[#allocation7] sm:$0xff] %vm60_vm0, %v1799_v5 }
0x1191   :  { %2412 = shalt.err (!%p2409_p6)
}
0x1192   :  { %s2413_s1 = scalar_lea.hbm %s2901_s7, 256 }
0x1193   :  { %p2414_p7 = scmp.ne.s32.totalorder %s2901_s7, %s2413_s1  ;;  %p2417_p8 = scmp.lt.u32.totalorder %s2413_s1, %s2901_s7 }
0x1195   :  { %p2419_p9 = pnand %p2417_p8, %p2414_p7 }
0x1197   :  { %2422 = shalt.err (!%p2419_p9)
}
0x1198   :  { %1814 = dma.vmem_to_hbm [thread:$0]  %s1809_s18, 256, %s2901_s7, [#allocation4], %s2430_s11, %s2430_s11, %s2431_s12  }
0x1199   :  { %2427 = dma.done.wait [#allocation4], 256  }
0x119a   :  { %2428 = vsyncadd [#allocation4], 4294967040 }
0x119b   :  { %1818 = vsyncpa [#allocation3], 1 }
0x119c   :  { %1819 = vsyncpa [#allocation6], 1 }
0x119d   :  { %1820 = vsyncpa [#allocation4], 1 }

</bundles_post_ra>
